<compile_context>
chip_gen: v7x
topology: tpu7x:2x2x1
jax: 0.10.0
libtpu: 0.0.40
codegen_flags: <defaults>
</compile_context>

<pallas_src>
import functools

import jax
import jax.numpy as jnp
from jax.experimental import pallas as pl
from jax.experimental.pallas import tpu as pltpu

INPUT_DIM = 3
HIDDEN_DIM = 128
OUTPUT_DIM = 2


def _round_up(x, m):
    return (x + m - 1) // m * m


def _num_tensorcores():
    """TensorCores per chip: 2 on v7x, 1 on v5e/v6e (conservative default 1)."""
    try:
        kind = jax.devices()[0].device_kind.lower()
    except Exception:
        return 1
    return 2 if ("v7" in kind or "7x" in kind) else 1


def _choose_tile_and_pad(n, tile_n, num_tc):
    """Pick a row tile (multiple of 128) and padded row count.

    Splits the per-core row share into the fewest <=tile_n chunks, then sizes the
    tile so chunks are (nearly) equal -> minimal padding. On multi-TC chips the
    padded row count is a multiple of tile*num_tc so the 'parallel' grid axis
    splits evenly across TensorCores.
    """
    per_core = -(-n // num_tc)                       # rows each core must handle
    steps_per_core = max(1, -(-per_core // max(128, tile_n)))
    tile = max(128, _round_up(-(-per_core // steps_per_core), 128))
    n_pad = _round_up(n, tile * num_tc)
    return tile, n_pad


def pinn_kernel(x_ref, w1_ref, b1_ref, w2_ref, b2_ref, w3_ref, b3_ref,
                w4_ref, b4_ref, o_ref, *, act_dtype):
    # ---- Layer 1: (tile, 3) @ (3, 128) -------------------------------------
    # K=3 would pad to an 8-sublane MXU tile (<3/8 efficiency), so do it as
    # three VPU broadcast-FMAs in f32 instead of an MXU matmul.
    x = x_ref[...]                                    # (tile, 3)  f32
    w1 = w1_ref[...]                                  # (3, 128)   f32
    h = (x[:, 0:1] * w1[0:1, :]
         + x[:, 1:2] * w1[1:2, :]
         + x[:, 2:3] * w1[2:3, :]
         + b1_ref[...])
    h = jnp.tanh(h.astype(act_dtype))                 # EUP tanh (f32 or bf16)

    # ---- Hidden layers: bf16 MXU matmuls, f32 accumulation ------------------
    h = jnp.dot(h.astype(jnp.bfloat16), w2_ref[...],
                preferred_element_type=jnp.float32) + b2_ref[...]
    h = jnp.tanh(h.astype(act_dtype))
    h = jnp.dot(h.astype(jnp.bfloat16), w3_ref[...],
                preferred_element_type=jnp.float32) + b3_ref[...]
    h = jnp.tanh(h.astype(act_dtype))

    # ---- Output layer: (tile, 128) @ (128, 128) -----------------------------
    # w4 is zero-padded 2 -> 128 columns so the output block is lane-dense
    # (unmasked stores); the wrapper slices the first 2 columns.
    out = jnp.dot(h.astype(jnp.bfloat16), w4_ref[...],
                  preferred_element_type=jnp.float32) + b4_ref[...]
    o_ref[...] = out.astype(o_ref.dtype)


@functools.partial(jax.jit, static_argnames=("tile_n", "bf16_elementwise"))
def pinn_forward(x, params, *, tile_n=2048, bf16_elementwise=False):
    """x: (N, 3) float32. params: w1..w4 with (in, out) layout, b1..b4 shaped (1, out)."""
    N, D = x.shape
    assert D == INPUT_DIM

    num_tc = _num_tensorcores()
    tile, n_pad = _choose_tile_and_pad(N, tile_n, num_tc)

    x_p = jnp.pad(x, ((0, n_pad - N), (0, 0))) if n_pad != N else x

    # MXU-layer weights in bf16 (f32 accumulation in-kernel); layer-1 weight and
    # all biases stay f32.
    w1 = params["w1"].astype(jnp.float32)
    b1 = params["b1"].astype(jnp.float32)
    w2 = params["w2"].astype(jnp.bfloat16)
    b2 = params["b2"].astype(jnp.float32)
    w3 = params["w3"].astype(jnp.bfloat16)
    b3 = params["b3"].astype(jnp.float32)
    # Lane-dense output: zero-pad the final layer to 128 output columns.
    w4 = jnp.zeros((HIDDEN_DIM, HIDDEN_DIM), jnp.bfloat16)
    w4 = w4.at[:, :OUTPUT_DIM].set(params["w4"].astype(jnp.bfloat16))
    b4 = jnp.zeros((1, HIDDEN_DIM), jnp.float32)
    b4 = b4.at[:, :OUTPUT_DIM].set(params["b4"].astype(jnp.float32))

    # Weights/biases use a constant index_map -> VMEM-resident across all steps.
    full = lambda shape: pl.BlockSpec(shape, lambda i: (0, 0))

    kernel = functools.partial(
        pinn_kernel,
        act_dtype=jnp.bfloat16 if bf16_elementwise else jnp.float32)

    out = pl.pallas_call(
        kernel,
        out_shape=jax.ShapeDtypeStruct((n_pad, HIDDEN_DIM), jnp.float32),
        grid_spec=pltpu.PrefetchScalarGridSpec(
            num_scalar_prefetch=0,
            grid=(n_pad // tile,),
            in_specs=[
                pl.BlockSpec((tile, INPUT_DIM), lambda i: (i, 0)),   # x tile
                full((INPUT_DIM, HIDDEN_DIM)),                       # w1 (f32)
                full((1, HIDDEN_DIM)),                               # b1
                full((HIDDEN_DIM, HIDDEN_DIM)),                      # w2 (bf16)
                full((1, HIDDEN_DIM)),                               # b2
                full((HIDDEN_DIM, HIDDEN_DIM)),                      # w3 (bf16)
                full((1, HIDDEN_DIM)),                               # b3
                full((HIDDEN_DIM, HIDDEN_DIM)),                      # w4 padded (bf16)
                full((1, HIDDEN_DIM)),                               # b4 padded
            ],
            out_specs=pl.BlockSpec((tile, HIDDEN_DIM), lambda i: (i, 0)),
        ),
        compiler_params=pltpu.CompilerParams(
            dimension_semantics=("parallel",),
            # Real footprint at tile=2048 is ~12-14 MiB (incl. the lane-padded
            # (tile,3) x block and (tile,128) intermediates); raise the scoped
            # limit so v5e (16 MiB default) / v7x (32 MiB default) don't spill.
            vmem_limit_bytes=64 * 1024 * 1024),
    )(x_p, w1, b1, w2, b2, w3, b3, w4, b4)

    return out[:N, :OUTPUT_DIM]


def init_params(key):
    """Deterministic init mimicking nn.Linear's uniform(-1/sqrt(fan_in), 1/sqrt(fan_in))."""
    dims = [(INPUT_DIM, HIDDEN_DIM), (HIDDEN_DIM, HIDDEN_DIM),
            (HIDDEN_DIM, HIDDEN_DIM), (HIDDEN_DIM, OUTPUT_DIM)]
    params = {}
    for idx, (fan_in, fan_out) in enumerate(dims, start=1):
        key, kw, kb = jax.random.split(key, 3)
        bound = 1.0 / jnp.sqrt(fan_in)
        params[f"w{idx}"] = jax.random.uniform(
            kw, (fan_in, fan_out), jnp.float32, -bound, bound)
        params[f"b{idx}"] = jax.random.uniform(
            kb, (1, fan_out), jnp.float32, -bound, bound)
    return params


def pinn_reference_f32(x, params):
    """Pure-f32 reference (matches the PyTorch module's semantics)."""
    hp = jax.lax.Precision.HIGHEST
    h = jnp.tanh(jnp.dot(x, params["w1"], precision=hp) + params["b1"])
    h = jnp.tanh(jnp.dot(h, params["w2"], precision=hp) + params["b2"])
    h = jnp.tanh(jnp.dot(h, params["w3"], precision=hp) + params["b3"])
    return jnp.dot(h, params["w4"], precision=hp) + params["b4"]


def pinn_reference_mixed(x, params):
    """Reference using the kernel's precision recipe (f32 layer 1 / tanh, bf16 MXU)."""
    bf16 = jnp.bfloat16
    hp = jax.lax.Precision.HIGHEST
    h = jnp.tanh(jnp.dot(x, params["w1"], precision=hp) + params["b1"])
    h = jnp.tanh(jnp.dot(h.astype(bf16), params["w2"].astype(bf16),
                         preferred_element_type=jnp.float32) + params["b2"])
    h = jnp.tanh(jnp.dot(h.astype(bf16), params["w3"].astype(bf16),
                         preferred_element_type=jnp.float32) + params["b3"])
    return jnp.dot(h.astype(bf16), params["w4"].astype(bf16),
                   preferred_element_type=jnp.float32) + params["b4"]


if __name__ == "__main__":
    key = jax.random.PRNGKey(0)
    kp, kx = jax.random.split(key)
    params = init_params(kp)

    # Small batch of collocation points (x, y, t); deliberately NOT a multiple
    # of the tile so the padding path is exercised.
    N = 200
    x = jax.random.normal(kx, (N, INPUT_DIM), dtype=jnp.float32)

    out = pinn_forward(x, params)
    out = jax.block_until_ready(out)
    assert out.shape == (N, OUTPUT_DIM)

    ref_mixed = pinn_reference_mixed(x, params)
    ref_f32 = pinn_reference_f32(x, params)

    err_mixed = float(jnp.max(jnp.abs(out - ref_mixed)))
    err_f32 = float(jnp.max(jnp.abs(out - ref_f32)))
    assert jnp.allclose(out, ref_mixed, atol=3e-3, rtol=3e-3), (
        f"mismatch vs mixed-precision reference (max abs err {err_mixed})")
    assert jnp.allclose(out, ref_f32, atol=5e-2, rtol=5e-2), (
        f"mismatch vs f32 reference (max abs err {err_f32})")

    print("KERNEL_OK")
</pallas_src>

<mosaic_0001>
module attributes {stable_mosaic.version = 11 : i64} {
  func.func @pinn_kernel(%arg0: i32, %arg1: memref<256x3xf32, #tpu.memory_space<vmem>>, %arg2: memref<3x128xf32, #tpu.memory_space<vmem>>, %arg3: memref<1x128xf32, #tpu.memory_space<vmem>>, %arg4: memref<128x128xbf16, #tpu.memory_space<vmem>>, %arg5: memref<1x128xf32, #tpu.memory_space<vmem>>, %arg6: memref<128x128xbf16, #tpu.memory_space<vmem>>, %arg7: memref<1x128xf32, #tpu.memory_space<vmem>>, %arg8: memref<128x128xbf16, #tpu.memory_space<vmem>>, %arg9: memref<1x128xf32, #tpu.memory_space<vmem>>, %arg10: memref<256x128xf32, #tpu.memory_space<vmem>>) attributes {dimension_semantics = [#tpu.dimension_semantics<parallel>], iteration_bounds = array<i64: 1>, scalar_prefetch = 0 : i64, scratch_operands = 0 : i64, tpu.core_type = #tpu.core_type<tc>, window_params = [{transform_indices = @transform_0, window_bounds = array<i64: 256, 3>}, {pipeline_mode = #tpu.pipeline_mode<synchronous>, transform_indices = @transform_1, window_bounds = array<i64: 3, 128>}, {pipeline_mode = #tpu.pipeline_mode<synchronous>, transform_indices = @transform_2, window_bounds = array<i64: 1, 128>}, {pipeline_mode = #tpu.pipeline_mode<synchronous>, transform_indices = @transform_3, window_bounds = array<i64: 128, 128>}, {pipeline_mode = #tpu.pipeline_mode<synchronous>, transform_indices = @transform_4, window_bounds = array<i64: 1, 128>}, {pipeline_mode = #tpu.pipeline_mode<synchronous>, transform_indices = @transform_5, window_bounds = array<i64: 128, 128>}, {pipeline_mode = #tpu.pipeline_mode<synchronous>, transform_indices = @transform_6, window_bounds = array<i64: 1, 128>}, {pipeline_mode = #tpu.pipeline_mode<synchronous>, transform_indices = @transform_7, window_bounds = array<i64: 128, 128>}, {pipeline_mode = #tpu.pipeline_mode<synchronous>, transform_indices = @transform_8, window_bounds = array<i64: 1, 128>}, {transform_indices = @transform_9, window_bounds = array<i64: 256, 128>}]} {
    %c0 = arith.constant 0 : index
    %c0_0 = arith.constant 0 : index
    %0 = vector.load %arg1[%c0, %c0_0] : memref<256x3xf32, #tpu.memory_space<vmem>>, vector<256x3xf32>
    %c0_1 = arith.constant 0 : index
    %c0_2 = arith.constant 0 : index
    %1 = vector.load %arg2[%c0_1, %c0_2] : memref<3x128xf32, #tpu.memory_space<vmem>>, vector<3x128xf32>
    %2 = vector.extract_strided_slice %0 {offsets = [0, 0], sizes = [256, 1], strides = [1, 1]} : vector<256x3xf32> to vector<256x1xf32>
    %3 = vector.extract_strided_slice %1 {offsets = [0, 0], sizes = [1, 128], strides = [1, 1]} : vector<3x128xf32> to vector<1x128xf32>
    %4 = vector.broadcast %2 : vector<256x1xf32> to vector<256x128xf32>
    %5 = vector.broadcast %3 : vector<1x128xf32> to vector<256x128xf32>
    %6 = arith.mulf %4, %5 : vector<256x128xf32>
    %7 = vector.extract_strided_slice %0 {offsets = [0, 1], sizes = [256, 1], strides = [1, 1]} : vector<256x3xf32> to vector<256x1xf32>
    %8 = vector.extract_strided_slice %1 {offsets = [1, 0], sizes = [1, 128], strides = [1, 1]} : vector<3x128xf32> to vector<1x128xf32>
    %9 = vector.broadcast %7 : vector<256x1xf32> to vector<256x128xf32>
    %10 = vector.broadcast %8 : vector<1x128xf32> to vector<256x128xf32>
    %11 = arith.mulf %9, %10 : vector<256x128xf32>
    %12 = arith.addf %6, %11 : vector<256x128xf32>
    %13 = vector.extract_strided_slice %0 {offsets = [0, 2], sizes = [256, 1], strides = [1, 1]} : vector<256x3xf32> to vector<256x1xf32>
    %14 = vector.extract_strided_slice %1 {offsets = [2, 0], sizes = [1, 128], strides = [1, 1]} : vector<3x128xf32> to vector<1x128xf32>
    %15 = vector.broadcast %13 : vector<256x1xf32> to vector<256x128xf32>
    %16 = vector.broadcast %14 : vector<1x128xf32> to vector<256x128xf32>
    %17 = arith.mulf %15, %16 : vector<256x128xf32>
    %18 = arith.addf %12, %17 : vector<256x128xf32>
    %c0_3 = arith.constant 0 : index
    %c0_4 = arith.constant 0 : index
    %19 = vector.load %arg3[%c0_3, %c0_4] : memref<1x128xf32, #tpu.memory_space<vmem>>, vector<1x128xf32>
    %20 = vector.broadcast %19 : vector<1x128xf32> to vector<256x128xf32>
    %21 = arith.addf %18, %20 : vector<256x128xf32>
    %22 = math.tanh %21 : vector<256x128xf32>
    %23 = arith.truncf %22 : vector<256x128xf32> to vector<256x128xbf16>
    %c0_5 = arith.constant 0 : index
    %c0_6 = arith.constant 0 : index
    %24 = vector.load %arg4[%c0_5, %c0_6] : memref<128x128xbf16, #tpu.memory_space<vmem>>, vector<128x128xbf16>
    %cst = arith.constant dense<0.000000e+00> : vector<256x128xf32>
    %25 = tpu.matmul %23, %24, %cst {dimension_numbers = #tpu.dot_dimension_numbers<[1], [0], [0], [1], [0, 0, 1, 1], [], []>} : vector<256x128xbf16>, vector<128x128xbf16>, vector<256x128xf32> -> vector<256x128xf32>
    %c0_7 = arith.constant 0 : index
    %c0_8 = arith.constant 0 : index
    %26 = vector.load %arg5[%c0_7, %c0_8] : memref<1x128xf32, #tpu.memory_space<vmem>>, vector<1x128xf32>
    %27 = vector.broadcast %26 : vector<1x128xf32> to vector<256x128xf32>
    %28 = arith.addf %25, %27 : vector<256x128xf32>
    %29 = math.tanh %28 : vector<256x128xf32>
    %30 = arith.truncf %29 : vector<256x128xf32> to vector<256x128xbf16>
    %c0_9 = arith.constant 0 : index
    %c0_10 = arith.constant 0 : index
    %31 = vector.load %arg6[%c0_9, %c0_10] : memref<128x128xbf16, #tpu.memory_space<vmem>>, vector<128x128xbf16>
    %cst_11 = arith.constant dense<0.000000e+00> : vector<256x128xf32>
    %32 = tpu.matmul %30, %31, %cst_11 {dimension_numbers = #tpu.dot_dimension_numbers<[1], [0], [0], [1], [0, 0, 1, 1], [], []>} : vector<256x128xbf16>, vector<128x128xbf16>, vector<256x128xf32> -> vector<256x128xf32>
    %c0_12 = arith.constant 0 : index
    %c0_13 = arith.constant 0 : index
    %33 = vector.load %arg7[%c0_12, %c0_13] : memref<1x128xf32, #tpu.memory_space<vmem>>, vector<1x128xf32>
    %34 = vector.broadcast %33 : vector<1x128xf32> to vector<256x128xf32>
    %35 = arith.addf %32, %34 : vector<256x128xf32>
    %36 = math.tanh %35 : vector<256x128xf32>
    %37 = arith.truncf %36 : vector<256x128xf32> to vector<256x128xbf16>
    %c0_14 = arith.constant 0 : index
    %c0_15 = arith.constant 0 : index
    %38 = vector.load %arg8[%c0_14, %c0_15] : memref<128x128xbf16, #tpu.memory_space<vmem>>, vector<128x128xbf16>
    %cst_16 = arith.constant dense<0.000000e+00> : vector<256x128xf32>
    %39 = tpu.matmul %37, %38, %cst_16 {dimension_numbers = #tpu.dot_dimension_numbers<[1], [0], [0], [1], [0, 0, 1, 1], [], []>} : vector<256x128xbf16>, vector<128x128xbf16>, vector<256x128xf32> -> vector<256x128xf32>
    %c0_17 = arith.constant 0 : index
    %c0_18 = arith.constant 0 : index
    %40 = vector.load %arg9[%c0_17, %c0_18] : memref<1x128xf32, #tpu.memory_space<vmem>>, vector<1x128xf32>
    %41 = vector.broadcast %40 : vector<1x128xf32> to vector<256x128xf32>
    %42 = arith.addf %39, %41 : vector<256x128xf32>
    %c0_19 = arith.constant 0 : index
    %c0_20 = arith.constant 0 : index
    %43 = vector.load %arg10[%c0_19, %c0_20] : memref<256x128xf32, #tpu.memory_space<vmem>>, vector<256x128xf32>
    tpu.vector_store %arg10[%c0_19, %c0_20], %42 {strides = array<i32>} : memref<256x128xf32, #tpu.memory_space<vmem>>, vector<256x128xf32>,
    return
  }
  func.func @transform_0(%arg0: i32) -> (i32, i32) {
    %c0_i32 = arith.constant 0 : i32
    %c0_i32_0 = arith.constant 0 : i32
    return %arg0, %c0_i32 : i32, i32
  }
  func.func @transform_1(%arg0: i32) -> (i32, i32) {
    %c0_i32 = arith.constant 0 : i32
    %c0_i32_0 = arith.constant 0 : i32
    %c0_i32_1 = arith.constant 0 : i32
    return %c0_i32, %c0_i32_0 : i32, i32
  }
  func.func @transform_2(%arg0: i32) -> (i32, i32) {
    %c0_i32 = arith.constant 0 : i32
    %c0_i32_0 = arith.constant 0 : i32
    %c0_i32_1 = arith.constant 0 : i32
    return %c0_i32, %c0_i32_0 : i32, i32
  }
  func.func @transform_3(%arg0: i32) -> (i32, i32) {
    %c0_i32 = arith.constant 0 : i32
    %c0_i32_0 = arith.constant 0 : i32
    %c0_i32_1 = arith.constant 0 : i32
    return %c0_i32, %c0_i32_0 : i32, i32
  }
  func.func @transform_4(%arg0: i32) -> (i32, i32) {
    %c0_i32 = arith.constant 0 : i32
    %c0_i32_0 = arith.constant 0 : i32
    %c0_i32_1 = arith.constant 0 : i32
    return %c0_i32, %c0_i32_0 : i32, i32
  }
  func.func @transform_5(%arg0: i32) -> (i32, i32) {
    %c0_i32 = arith.constant 0 : i32
    %c0_i32_0 = arith.constant 0 : i32
    %c0_i32_1 = arith.constant 0 : i32
    return %c0_i32, %c0_i32_0 : i32, i32
  }
  func.func @transform_6(%arg0: i32) -> (i32, i32) {
    %c0_i32 = arith.constant 0 : i32
    %c0_i32_0 = arith.constant 0 : i32
    %c0_i32_1 = arith.constant 0 : i32
    return %c0_i32, %c0_i32_0 : i32, i32
  }
  func.func @transform_7(%arg0: i32) -> (i32, i32) {
    %c0_i32 = arith.constant 0 : i32
    %c0_i32_0 = arith.constant 0 : i32
    %c0_i32_1 = arith.constant 0 : i32
    return %c0_i32, %c0_i32_0 : i32, i32
  }
  func.func @transform_8(%arg0: i32) -> (i32, i32) {
    %c0_i32 = arith.constant 0 : i32
    %c0_i32_0 = arith.constant 0 : i32
    %c0_i32_1 = arith.constant 0 : i32
    return %c0_i32, %c0_i32_0 : i32, i32
  }
  func.func @transform_9(%arg0: i32) -> (i32, i32) {
    %c0_i32 = arith.constant 0 : i32
    %c0_i32_0 = arith.constant 0 : i32
    return %arg0, %c0_i32 : i32, i32
  }
}

</mosaic_0001>

<bundles_post_ra>
// kernel: pinn_forward.1
= control target key start
LH: loop header
LB: loop body
LE: loop exit
PB: predicated region body
PF: predicated region fallthrough
CT: control target
= control target key end

     0   :  { %14 = vsyncpa [#allocation3], 0  ;;  %s3118_s0 = inlined_call_operand.hbm [shape: f32[256,3], index: 0, kind: input, shape index: {}]   ;;  %s3119_s1 = inlined_call_operand.hbm [shape: f32[3,128], index: 1, kind: input, shape index: {}]   ;;  %s3120_s2 = inlined_call_operand.hbm [shape: f32[1,128], index: 2, kind: input, shape index: {}]   ;;  %s3121_s3 = inlined_call_operand.hbm [shape: bf16[128,128], index: 3, kind: input, shape index: {}]   ;;  %s3122_s4 = inlined_call_operand.hbm [shape: f32[1,128], index: 4, kind: input, shape index: {}]   ;;  %s3123_s5 = inlined_call_operand.hbm [shape: bf16[128,128], index: 5, kind: input, shape index: {}]   ;;  %s3124_s6 = inlined_call_operand.hbm [shape: f32[1,128], index: 6, kind: input, shape index: {}]   ;;  %s3125_s7 = inlined_call_operand.hbm [shape: bf16[128,128], index: 7, kind: input, shape index: {}]   ;;  %s3126_s8 = inlined_call_operand.hbm [shape: f32[1,128], index: 8, kind: input, shape index: {}]   ;;  %s3127_s9 = inlined_call_operand.hbm [shape: f32[256,128], index: 9, kind: output, shape index: {}]  }
   0x1   :  { %15 = vsyncpa [#allocation6], 0 }
   0x2   :  { %16 = vsyncpa [#allocation9], 0 }
   0x3   :  { %17 = vsyncpa [#allocation12], 0 }
   0x4   :  { %18 = vsyncpa [#allocation15], 0 }
   0x5   :  { %19 = vsyncpa [#allocation4], 0  ;;  %s2468_s30 = smov [#allocation5]   ;;  %s2469_s11 = smov [#allocation8]  }
   0x6   :  { %s38_s10 = sshll.u32 %s2468_s30, 4  ;;  %s57_s12 = sshll.u32 %s2469_s11, 4  ;;  %s39_s10 = int_to_ptr.vmem [resolvable:$true] %s38_s10  ;;  %s2535_s12 = int_to_ptr.vmem [resolvable:$true] %s57_s12 }
   0x7   :  { %s2236_s15 = scalar_lea.hbm %s3119_s1, 64 }
   0x8   :  { %p2237_p0 = scmp.ne.s32.totalorder %s3119_s1, %s2236_s15  ;;  %p2240_p1 = scmp.lt.u32.totalorder %s2236_s15, %s3119_s1 }
   0xa   :  { %p2242_p2 = pnand %p2240_p1, %p2237_p0 }
   0xc   :  { %2245 = shalt.err (!%p2242_p2)
}
   0xd   :  { %s2246_s20 = scalar_lea.vmem %s39_s10, 64  ;;  %p2251_p4 = scmp.lt.s32.totalorder %s39_s10, %s39_s10 }
   0xe   :  { %p2247_p3 = scmp.ne.s32.totalorder %s39_s10, %s2246_s20  ;;  %p2252_p5 = scmp.lt.s32.totalorder %s2246_s20, %s2246_s20 }
  0x10   :  { %p2253_p6 = por %p2252_p5, %p2251_p4 }
  0x12   :  { %p2254_p7 = pnand %p2253_p6, %p2247_p3 }
  0x14   :  { %2257 = shalt.err (!%p2254_p7)
}
  0x15   :  { %41 = dma.hbm_to_vmem [thread:$0]  %s3119_s1, 64, %s39_s10, [#allocation6]  }
  0x16   :  { %s2258_s25 = scalar_lea.hbm %s3121_s3, 1024 }
  0x17   :  { %p2259_p8 = scmp.ne.s32.totalorder %s3121_s3, %s2258_s25  ;;  %p2262_p9 = scmp.lt.u32.totalorder %s2258_s25, %s3121_s3 }
  0x19   :  { %p2264_p10 = pnand %p2262_p9, %p2259_p8 }
  0x1b   :  { %2267 = shalt.err (!%p2264_p10)
}
  0x1c   :  { %s2268_s30 = scalar_lea.vmem %s2535_s12, 1024  ;;  %p2273_p12 = scmp.lt.s32.totalorder %s2535_s12, %s2535_s12 }
  0x1d   :  { %p2269_p11 = scmp.ne.s32.totalorder %s2535_s12, %s2268_s30  ;;  %p2274_p13 = scmp.lt.s32.totalorder %s2268_s30, %s2268_s30 }
  0x1f   :  { %p2275_p0 = por %p2274_p13, %p2273_p12 }
  0x21   :  { %p2276_p1 = pnand %p2275_p0, %p2269_p11 }
  0x23   :  { %2279 = shalt.err (!%p2276_p1)
}
  0x24   :  { %s2470_s1 = smov 64   ;;  %s2471_s10 = smov 4  }
  0x25   :  { %63 = dma.hbm_to_vmem [thread:$0]  %s3121_s3, 1024, %s2535_s12, [#allocation9], %s2470_s1, %s2470_s1, %s2471_s10  }
  0x26   :  { %s2472_s14 = smov [#allocation11]   ;;  %s2473_s16 = smov [#allocation14]  }
  0x27   :  { %s79_s15 = sshll.u32 %s2472_s14, 4  ;;  %s101_s17 = sshll.u32 %s2473_s16, 4  ;;  %s80_s15 = int_to_ptr.vmem [resolvable:$true] %s79_s15  ;;  %s2569_s17 = int_to_ptr.vmem [resolvable:$true] %s101_s17 }
  0x28   :  { %s2280_s20 = scalar_lea.hbm %s3123_s5, 1024 }
  0x29   :  { %p2281_p2 = scmp.ne.s32.totalorder %s3123_s5, %s2280_s20  ;;  %p2284_p3 = scmp.lt.u32.totalorder %s2280_s20, %s3123_s5 }
  0x2b   :  { %p2286_p4 = pnand %p2284_p3, %p2281_p2 }
  0x2d   :  { %2289 = shalt.err (!%p2286_p4)
}
  0x2e   :  { %s2290_s3 = scalar_lea.vmem %s80_s15, 1024  ;;  %p2295_p6 = scmp.lt.s32.totalorder %s80_s15, %s80_s15 }
  0x2f   :  { %p2291_p5 = scmp.ne.s32.totalorder %s80_s15, %s2290_s3  ;;  %p2296_p7 = scmp.lt.s32.totalorder %s2290_s3, %s2290_s3 }
  0x31   :  { %p2297_p8 = por %p2296_p7, %p2295_p6 }
  0x33   :  { %p2298_p9 = pnand %p2297_p8, %p2291_p5 }
  0x35   :  { %2301 = shalt.err (!%p2298_p9)
}
  0x36   :  { %85 = dma.hbm_to_vmem [thread:$0]  %s3123_s5, 1024, %s80_s15, [#allocation12], %s2470_s1, %s2470_s1, %s2471_s10  }
  0x37   :  { %s2302_s28 = scalar_lea.hbm %s3125_s7, 1024 }
  0x38   :  { %p2303_p10 = scmp.ne.s32.totalorder %s3125_s7, %s2302_s28  ;;  %p2306_p11 = scmp.lt.u32.totalorder %s2302_s28, %s3125_s7 }
  0x3a   :  { %p2308_p12 = pnand %p2306_p11, %p2303_p10 }
  0x3c   :  { %2311 = shalt.err (!%p2308_p12)
}
  0x3d   :  { %s2312_s14 = scalar_lea.vmem %s2569_s17, 1024  ;;  %p2317_p0 = scmp.lt.s32.totalorder %s2569_s17, %s2569_s17 }
  0x3e   :  { %p2313_p13 = scmp.ne.s32.totalorder %s2569_s17, %s2312_s14  ;;  %p2318_p1 = scmp.lt.s32.totalorder %s2312_s14, %s2312_s14 }
  0x40   :  { %p2319_p2 = por %p2318_p1, %p2317_p0 }
  0x42   :  { %p2320_p3 = pnand %p2319_p2, %p2313_p13 }
  0x44   :  { %2323 = shalt.err (!%p2320_p3)
}
  0x45   :  { %107 = dma.hbm_to_vmem [thread:$0]  %s3125_s7, 1024, %s2569_s17, [#allocation15], %s2470_s1, %s2470_s1, %s2471_s10  }
  0x46   :  { %s2474_s16 = smov [#allocation2]   ;;  %s2324_s21 = scalar_lea.hbm %s3118_s0, 4096 }
  0x47   :  { %s25_s18 = sshll.u32 %s2474_s16, 4  ;;  %p2325_p4 = scmp.ne.s32.totalorder %s3118_s0, %s2324_s21  ;;  %s26_s18 = int_to_ptr.vmem [resolvable:$true] %s25_s18 }
  0x48   :  { %p2328_p5 = scmp.lt.u32.totalorder %s2324_s21, %s3118_s0 }
  0x4a   :  { %p2330_p6 = pnand %p2328_p5, %p2325_p4 }
  0x4c   :  { %2333 = shalt.err (!%p2330_p6)
}
  0x4d   :  { %s2334_s12 = scalar_lea.vmem %s26_s18, 4096  ;;  %p2339_p8 = scmp.lt.s32.totalorder %s26_s18, %s26_s18 }
  0x4e   :  { %p2335_p7 = scmp.ne.s32.totalorder %s26_s18, %s2334_s12  ;;  %p2340_p9 = scmp.lt.s32.totalorder %s2334_s12, %s2334_s12 }
  0x50   :  { %p2341_p10 = por %p2340_p9, %p2339_p8 }
  0x52   :  { %p2342_p11 = pnand %p2341_p10, %p2335_p7 }
  0x54   :  { %2345 = shalt.err (!%p2342_p11)
}
  0x55   :  { %s2475_s7 = smov 128   ;;  %s2476_s1 = smov 8  }
  0x56   :  { %31 = dma.hbm_to_vmem [thread:$0]  %s3118_s0, 4096, %s26_s18, [#allocation3], %s2475_s7, %s2475_s7, %s2476_s1  }
  0x57   :  { %s2477_s25 = smov [#allocation7]   ;;  %s2478_s27 = smov [#allocation10]  }
  0x58   :  { %s48_s26 = sshll.u32 %s2477_s25, 4  ;;  %s70_s28 = sshll.u32 %s2478_s27, 4  ;;  %s49_s26 = int_to_ptr.vmem [resolvable:$true] %s48_s26  ;;  %s71_s28 = int_to_ptr.vmem [resolvable:$true] %s70_s28 }
  0x59   :  { %s2346_s11 = scalar_lea.hbm %s3120_s2, 16 }
  0x5a   :  { %p2347_p12 = scmp.ne.s32.totalorder %s3120_s2, %s2346_s11  ;;  %p2350_p13 = scmp.lt.u32.totalorder %s2346_s11, %s3120_s2 }
  0x5c   :  { %p2352_p0 = pnand %p2350_p13, %p2347_p12 }
  0x5e   :  { %2355 = shalt.err (!%p2352_p0)
}
  0x5f   :  { %s2356_s0 = scalar_lea.vmem %s49_s26, 16  ;;  %s2360_s16 = scalar_lea.vmem %s49_s26, 32 }
  0x60   :  { %p2357_p1 = scmp.ne.s32.totalorder %s49_s26, %s2356_s0  ;;  %p2361_p2 = scmp.lt.s32.totalorder %s49_s26, %s49_s26 }
  0x61   :  { %p2362_p3 = scmp.lt.s32.totalorder %s2360_s16, %s2356_s0 }
  0x63   :  { %p2363_p4 = por %p2362_p3, %p2361_p2 }
  0x65   :  { %p2364_p5 = pnand %p2363_p4, %p2357_p1 }
  0x67   :  { %2367 = shalt.err (!%p2364_p5)
}
  0x68   :  { %51 = dma.hbm_to_vmem [thread:$0]  %s3120_s2, 16, %s49_s26, [#allocation6]  }
  0x69   :  { %s2368_s22 = scalar_lea.hbm %s3122_s4, 16 }
  0x6a   :  { %p2369_p6 = scmp.ne.s32.totalorder %s3122_s4, %s2368_s22  ;;  %p2372_p7 = scmp.lt.u32.totalorder %s2368_s22, %s3122_s4 }
  0x6c   :  { %p2374_p8 = pnand %p2372_p7, %p2369_p6 }
  0x6e   :  { %2377 = shalt.err (!%p2374_p8)
}
  0x6f   :  { %s2378_s10 = scalar_lea.vmem %s71_s28, 16  ;;  %s2382_s17 = scalar_lea.vmem %s71_s28, 32 }
  0x70   :  { %p2379_p9 = scmp.ne.s32.totalorder %s71_s28, %s2378_s10  ;;  %p2383_p10 = scmp.lt.s32.totalorder %s71_s28, %s71_s28 }
  0x71   :  { %p2384_p11 = scmp.lt.s32.totalorder %s2382_s17, %s2378_s10 }
  0x73   :  { %p2385_p12 = por %p2384_p11, %p2383_p10 }
  0x75   :  { %p2386_p13 = pnand %p2385_p12, %p2379_p9 }
  0x77   :  { %2389 = shalt.err (!%p2386_p13)
}
  0x78   :  { %73 = dma.hbm_to_vmem [thread:$0]  %s3122_s4, 16, %s71_s28, [#allocation9]  }
  0x79   :  { %s2479_s26 = smov [#allocation13]   ;;  %s2480_s29 = smov [#allocation16]  }
  0x7a   :  { %s92_s27 = sshll.u32 %s2479_s26, 4  ;;  %s114_s30 = sshll.u32 %s2480_s29, 4  ;;  %s93_s27 = int_to_ptr.vmem [resolvable:$true] %s92_s27  ;;  %s115_s30 = int_to_ptr.vmem [resolvable:$true] %s114_s30 }
  0x7b   :  { %s2390_s14 = scalar_lea.hbm %s3124_s6, 16 }
  0x7c   :  { %p2391_p0 = scmp.ne.s32.totalorder %s3124_s6, %s2390_s14  ;;  %p2394_p1 = scmp.lt.u32.totalorder %s2390_s14, %s3124_s6 }
  0x7e   :  { %p2396_p2 = pnand %p2394_p1, %p2391_p0 }
  0x80   :  { %2399 = shalt.err (!%p2396_p2)
}
  0x81   :  { %s2400_s4 = scalar_lea.vmem %s93_s27, 16  ;;  %s2404_s28 = scalar_lea.vmem %s93_s27, 32 }
  0x82   :  { %p2401_p3 = scmp.ne.s32.totalorder %s93_s27, %s2400_s4  ;;  %p2405_p4 = scmp.lt.s32.totalorder %s93_s27, %s93_s27 }
  0x83   :  { %p2406_p5 = scmp.lt.s32.totalorder %s2404_s28, %s2400_s4 }
  0x85   :  { %p2407_p6 = por %p2406_p5, %p2405_p4 }
  0x87   :  { %p2408_p7 = pnand %p2407_p6, %p2401_p3 }
  0x89   :  { %2411 = shalt.err (!%p2408_p7)
}
  0x8a   :  { %95 = dma.hbm_to_vmem [thread:$0]  %s3124_s6, 16, %s93_s27, [#allocation12]  }
  0x8b   :  { %s2412_s22 = scalar_lea.hbm %s3126_s8, 16 }
  0x8c   :  { %p2413_p8 = scmp.ne.s32.totalorder %s3126_s8, %s2412_s22  ;;  %p2416_p9 = scmp.lt.u32.totalorder %s2412_s22, %s3126_s8 }
  0x8e   :  { %p2418_p10 = pnand %p2416_p9, %p2413_p8 }
  0x90   :  { %2421 = shalt.err (!%p2418_p10)
}
  0x91   :  { %s2422_s10 = scalar_lea.vmem %s115_s30, 16  ;;  %s2426_s17 = scalar_lea.vmem %s115_s30, 32 }
  0x92   :  { %p2423_p11 = scmp.ne.s32.totalorder %s115_s30, %s2422_s10  ;;  %p2427_p12 = scmp.lt.s32.totalorder %s115_s30, %s115_s30 }
  0x93   :  { %p2428_p13 = scmp.lt.s32.totalorder %s2426_s17, %s2422_s10 }
  0x95   :  { %p2429_p0 = por %p2428_p13, %p2427_p12 }
  0x97   :  { %p2430_p1 = pnand %p2429_p0, %p2423_p11 }
  0x99   :  { %2433 = shalt.err (!%p2430_p1)
}
  0x9a   :  { %117 = dma.hbm_to_vmem [thread:$0]  %s3126_s8, 16, %s115_s30, [#allocation15]  }
  0x9b   :  { %2456 = dma.done.wait [#allocation3], 4096  }
  0x9c   :  { %2457 = vsyncadd [#allocation3], 4294963200 }
  0x9d   :  { %2458 = dma.done.wait [#allocation6], 80  }
  0x9e   :  { %2459 = vsyncadd [#allocation6], 4294967216 }
  0x9f   :  { %2460 = dma.done.wait [#allocation9], 1040  }
  0xa0   :  { %2461 = vsyncadd [#allocation9], 4294966256 }
  0xa1   :  { %2462 = dma.done.wait [#allocation12], 1040  }
  0xa2   :  { %2463 = vsyncadd [#allocation12], 4294966256 }
  0xa3   :  { %2464 = dma.done.wait [#allocation15], 1040  }
  0xa4   :  { %2465 = vsyncadd [#allocation15], 4294966256  ;;  %v2481_v0 = vmov 1   ;;  %v2671_v1 = vld [vmem:[#allocation2 + $0x10] sm:$0xff]  ;;  %v146_v2 = vld [vmem:[#allocation2] sm:$0xff]  ;;  %v2482_v7 = vmov 0   ;;  %v339_v60 = vlaneseq }
  0xa5   :  { %1978 = vset.pattern.permute.xlu0 %v2481_v0  ;;  %1976 = vset.pattern.permute.xlu1 %v2481_v0  ;;  %v151_v3 = vld [vmem:[#allocation2 + $0x28] sm:$0xff]  ;;  %v152_v5 = vld [vmem:[#allocation2 + $0x30] sm:$0xff]  ;;  %v149_v6 = vld [vmem:[#allocation2 + $0x18] sm:$0xff]  ;;  %v2483_v8 = vmov 2   ;;  %s2484_s8 = smov [#allocation17]  }
  0xa6   :  { %384 = vperm.xlu0 %1978, %v2671_v1   ;;  %376 = vperm.xlu1 %1976, %v146_v2   ;;  %v147_v4 = vld [vmem:[#allocation2 + $0x8] sm:$0xff]  ;;  %v150_v9 = vld [vmem:[#allocation2 + $0x20] sm:$0xff]  ;;  %v153_v10 = vld [vmem:[#allocation2 + $0x38] sm:$0xff]  ;;  %v340_v63 = vshrl.u32 %v339_v60, 7  ;;  %s1683_s25 = sshll.u32 %s2484_s8, 4  ;;  %s1684_s25 = int_to_ptr.vmem [resolvable:$true] %s1683_s25 }
  0xa7   :  { %v2678_v11 = vld [vmem:[#allocation2 + $0x48] sm:$0xff]  ;;  %v2682_v12 = vld [vmem:[#allocation2 + $0x60] sm:$0xff]  ;;  %v2685_v13 = vld [vmem:[#allocation2 + $0x78] sm:$0xff]  ;;  %s2434_s26 = scalar_lea.vmem %s1684_s25, 4096  ;;  %p2439_p3 = scmp.lt.s32.totalorder %s1684_s25, %s1684_s25 }
  0xa8   :  { %v2689_v14 = vld [vmem:[#allocation2 + $0x88] sm:$0xff]  ;;  %v2693_v15 = vld [vmem:[#allocation2 + $0xa0] sm:$0xff]  ;;  %v2697_v16 = vld [vmem:[#allocation2 + $0xb8] sm:$0xff]  ;;  %p2435_p2 = scmp.ne.s32.totalorder %s1684_s25, %s2434_s26  ;;  %p2440_p4 = scmp.lt.s32.totalorder %s2434_s26, %s2434_s26 }
  0xa9   :  { %v2700_v17 = vld [vmem:[#allocation2 + $0xc8] sm:$0xff]  ;;  %v2022_v20 = vld [vmem:[#allocation8 + $0x10] sm:$0xff]   ;;  %v154_v21 = vld [vmem:[#allocation2 + $0x40] sm:$0xff] }
  0xaa   :  { %396 = vperm.xlu0 %1978, %v151_v3   ;;  %380 = vperm.xlu1 %1976, %v147_v4   ;;  %v2020_v18 = vld [vmem:[#allocation8] sm:$0xff]   ;;  %v2021_v19 = vld [vmem:[#allocation8 + $0x8] sm:$0xff]   ;;  %v2023_v22 = vld [vmem:[#allocation8 + $0x18] sm:$0xff]   ;;  %p2441_p5 = por %p2440_p4, %p2439_p3 }
  0xab   :  { %1799 = vmatprep.subr.bf16.mxu0 %v2020_v18  ;;  %1943 = vmatprep.subr.bf16.mxu1 %v2020_v18  ;;  %v2024_v23 = vld [vmem:[#allocation8 + $0x20] sm:$0xff]   ;;  %v2025_v24 = vld [vmem:[#allocation8 + $0x28] sm:$0xff]   ;;  %v2026_v26 = vld [vmem:[#allocation8 + $0x30] sm:$0xff]  }
  0xac   :  { %1800 = vmatpush3.bf16.msra.mxu0 %v2020_v18  ;;  %1951 = vmatpush3.bf16.msra.mxu1 %v2020_v18  ;;  %v156_v25 = vld [vmem:[#allocation2 + $0x50] sm:$0xff]  ;;  %v157_v27 = vld [vmem:[#allocation2 + $0x58] sm:$0xff]  ;;  %v2724_v31 = vld [vmem:[#allocation2 + $0xe0] sm:$0xff]  ;;  %p2442_p6 = pnand %p2441_p5, %p2435_p2 }
  0xad   :  { %1801 = vmatprep.subr.bf16.mxu0 %v2021_v19  ;;  %1944 = vmatprep.subr.bf16.mxu1 %v2021_v19  ;;  %v2027_v28 = vld [vmem:[#allocation8 + $0x38] sm:$0xff]   ;;  %v2715_v29 = vld [vmem:[#allocation2 + $0x90] sm:$0xff]  ;;  %v159_v32 = vld [vmem:[#allocation2 + $0x68] sm:$0xff] }
  0xae   :  { %400 = vperm.xlu0 %1978, %v152_v5   ;;  %1977 = vset.pattern.permute.xlu1 %v2482_v7  ;;  %v2721_v30 = vld [vmem:[#allocation2 + $0xd0] sm:$0xff]  ;;  %v2735_v34 = vld [vmem:[#allocation2 + $0xa8] sm:$0xff]  ;;  %v162_v40 = vld [vmem:[#allocation2 + $0x80] sm:$0xff] }
  0xaf   :  { %196 = vperm.xlu1 %1977, %v149_v6   ;;  %v160_v33 = vld [vmem:[#allocation2 + $0x70] sm:$0xff]  ;;  %v2752_v41 = vld [vmem:[#allocation2 + $0xe8] sm:$0xff]  ;;  %v165_v49 = vld [vmem:[#allocation2 + $0x98] sm:$0xff] }
  0xb0   :  { %1802 = vmatpush3.bf16.msra.mxu0 %v2021_v19  ;;  %1952 = vmatpush3.bf16.msra.mxu1 %v2021_v19  ;;  %v2739_v35 = vld [vmem:[#allocation2 + $0xb0] sm:$0xff]  ;;  %v2767_v50 = vld [vmem:[#allocation2 + $0xf8] sm:$0xff] }
  0xb1   :  { %1803 = vmatprep.subr.bf16.mxu0 %v2022_v20  ;;  %1945 = vmatprep.subr.bf16.mxu1 %v2022_v20  ;;  %v2758_v44 = vld [vmem:[#allocation2 + $0xf0] sm:$0xff] }
  0xb2   :  { %1984 = vset.pattern.permute.xlu0 %v2483_v8 }
  0xb3   :  { %576 = vperm.xlu0 %1984, %v147_v4   ;;  %1979 = vset.pattern.permute.xlu1 %v2481_v0 }
  0xb4   :  { %388 = vperm.xlu1 %1979, %v149_v6   ;;  %1804 = vmatpush3.bf16.msra.mxu0 %v2022_v20 }
  0xb5   :  { %1953 = vmatpush3.bf16.msra.mxu1 %v2022_v20  ;;  %1805 = vmatprep.subr.bf16.mxu0 %v2023_v22 }
  0xb6   :  { %1946 = vmatprep.subr.bf16.mxu1 %v2023_v22 }
  0xb7   :  { %588 = vperm.xlu0 %1984, %v150_v9  }
  0xb8   :  { %1980 = vset.pattern.permute.xlu1 %v2483_v8  ;;  %1806 = vmatpush3.bf16.msra.mxu0 %v2023_v22 }
  0xb9   :  { %572 = vperm.xlu1 %1980, %v146_v2   ;;  %1954 = vmatpush3.bf16.msra.mxu1 %v2023_v22 }
  0xba   :  { %1807 = vmatprep.subr.bf16.mxu0 %v2024_v23  ;;  %1947 = vmatprep.subr.bf16.mxu1 %v2024_v23 }
  0xbb   :  { %600 = vperm.xlu0 %1984, %v153_v10  }
  0xbc   :  { %1808 = vmatpush3.bf16.msra.mxu0 %v2024_v23 }
  0xbd   :  { %580 = vperm.xlu1 %1980, %v2671_v1   ;;  %1955 = vmatpush3.bf16.msra.mxu1 %v2024_v23 }
  0xbe   :  { %1809 = vmatprep.subr.bf16.mxu0 %v2025_v24  ;;  %1948 = vmatprep.subr.bf16.mxu1 %v2025_v24 }
  0xbf   :  { %608 = vperm.xlu0 %1984, %v2678_v11  }
  0xc0   :  { %1810 = vmatpush3.bf16.msra.mxu0 %v2025_v24 }
  0xc1   :  { %584 = vperm.xlu1 %1980, %v149_v6   ;;  %1956 = vmatpush3.bf16.msra.mxu1 %v2025_v24  ;;  %v701_v6 = vsub.s32 2, %v340_v63 }
  0xc2   :  { %1811 = vmatprep.subr.bf16.mxu0 %v2026_v26  ;;  %1949 = vmatprep.subr.bf16.mxu1 %v2026_v26 }
  0xc3   :  { %620 = vperm.xlu0 %1984, %v2682_v12  }
  0xc4   :  { %1812 = vmatpush3.bf16.msra.mxu0 %v2026_v26 }
  0xc5   :  { %1981 = vset.pattern.permute.xlu1 %v2482_v7  ;;  %1957 = vmatpush3.bf16.msra.mxu1 %v2026_v26 }
  0xc6   :  { %206 = vperm.xlu1 %1981, %v151_v3   ;;  %1813 = vmatprep.subr.bf16.mxu0 %v2027_v28 }
  0xc7   :  { %632 = vperm.xlu0 %1984, %v2685_v13   ;;  %1950 = vmatprep.subr.bf16.mxu1 %v2027_v28 }
  0xc8   :  { %1814 = vmatpush3.bf16.msra.mxu0 %v2027_v28 }
  0xc9   :  { %1958 = vmatpush3.bf16.msra.mxu1 %v2027_v28 }
  0xca   :  { %1982 = vset.pattern.permute.xlu1 %v2481_v0 }
  0xcb   :  { %640 = vperm.xlu0 %1984, %v2689_v14   ;;  %392 = vperm.xlu1 %1982, %v150_v9  }
  0xcf   :  { %652 = vperm.xlu0 %1984, %v2693_v15   ;;  %1983 = vset.pattern.permute.xlu1 %v2482_v7 }
  0xd0   :  { %211 = vperm.xlu1 %1983, %v152_v5  }
  0xd3   :  { %664 = vperm.xlu0 %1984, %v2697_v16  }
  0xd4   :  { %216 = vperm.xlu1 %1983, %v153_v10  }
  0xd7   :  { %672 = vperm.xlu0 %1984, %v2700_v17  }
  0xd8   :  { %1985 = vset.pattern.permute.xlu1 %v2481_v0 }
  0xd9   :  { %404 = vperm.xlu1 %1985, %v153_v10  }
  0xdb   :  { %2012 = vset.pattern.permute.xlu0 %v2482_v7 }
  0xdc   :  { %181 = vperm.xlu0 %2012, %v146_v2  }
  0xdd   :  { %1986 = vset.pattern.permute.xlu1 %v2483_v8 }
  0xde   :  { %592 = vperm.xlu1 %1986, %v151_v3   ;;  %v505_v3 = vsub.s32 1, %v340_v63 }
  0xe0   :  { %186 = vperm.xlu0 %2012, %v147_v4   ;;  %v178_v4 = vld [vmem:[#allocation5] sm:$0x7] }
  0xe1   :  { %v2798_v10 = vrot.slane %v178_v4, %v505_v3 }
  0xe2   :  { %596 = vperm.xlu1 %1986, %v152_v5   ;;  %v341_v5 = vsub.s32 0, %v340_v63 }
  0xe4   :  { %191 = vperm.xlu0 %2012, %v2671_v1  }
  0xe6   :  { %1987 = vset.pattern.permute.xlu1 %v2482_v7 }
  0xe7   :  { %221 = vperm.xlu1 %1987, %v154_v21  }
  0xe8   :  { %201 = vperm.xlu0 %2012, %v150_v9  }
  0xeb   :  { %1988 = vset.pattern.permute.xlu1 %v2481_v0 }
  0xec   :  { %226 = vperm.xlu0 %2012, %v2678_v11   ;;  %408 = vperm.xlu1 %1988, %v154_v21  }
  0xf0   :  { %231 = vperm.xlu0 %2012, %v156_v25   ;;  %412 = vperm.xlu1 %1988, %v2678_v11  }
  0xf4   :  { %241 = vperm.xlu0 %2012, %v2682_v12   ;;  %1989 = vset.pattern.permute.xlu1 %v2482_v7 }
  0xf5   :  { %236 = vperm.xlu1 %1989, %v157_v27  }
  0xf8   :  { %266 = vperm.xlu0 %2012, %v2689_v14  }
  0xf9   :  { %1990 = vset.pattern.permute.xlu1 %v2481_v0 }
  0xfa   :  { %420 = vperm.xlu1 %1990, %v157_v27  }
  0xfc   :  { %271 = vperm.xlu0 %2012, %v2715_v29  }
  0xfe   :  { %1991 = vset.pattern.permute.xlu1 %v2483_v8 }
  0xff   :  { %604 = vperm.xlu1 %1991, %v154_v21  }
 0x100   :  { %281 = vperm.xlu0 %2012, %v2693_v15  }
 0x103   :  { %612 = vperm.xlu1 %1991, %v156_v25  }
 0x104   :  { %306 = vperm.xlu0 %2012, %v2700_v17  }
 0x107   :  { %616 = vperm.xlu1 %1991, %v157_v27  }
 0x108   :  { %311 = vperm.xlu0 %2012, %v2721_v30  }
 0x10b   :  { %1992 = vset.pattern.permute.xlu1 %v2482_v7 }
 0x10c   :  { %321 = vperm.xlu0 %2012, %v2724_v31   ;;  %246 = vperm.xlu1 %1992, %v159_v32  }
 0x110   :  { %2013 = vset.pattern.permute.xlu0 %v2481_v0  ;;  %1993 = vset.pattern.permute.xlu1 %v2481_v0 }
 0x111   :  { %416 = vperm.xlu0 %2013, %v156_v25   ;;  %424 = vperm.xlu1 %1993, %v2682_v12   ;;  %v2800_v12 = vrot.slane %v178_v4, %v341_v5 }
 0x115   :  { %428 = vperm.xlu0 %2013, %v159_v32   ;;  %1994 = vset.pattern.permute.xlu1 %v2482_v7 }
 0x116   :  { %251 = vperm.xlu1 %1994, %v160_v33  }
 0x119   :  { %432 = vperm.xlu0 %2013, %v160_v33  }
 0x11a   :  { %256 = vperm.xlu1 %1994, %v2685_v13  }
 0x11d   :  { %448 = vperm.xlu0 %2013, %v2715_v29  }
 0x11e   :  { %1995 = vset.pattern.permute.xlu1 %v2481_v0 }
 0x11f   :  { %436 = vperm.xlu1 %1995, %v2685_v13   ;;  %v2802_v13 = vrot.slane %v178_v4, %v701_v6 }
 0x121   :  { %460 = vperm.xlu0 %2013, %v2735_v34  }
 0x123   :  { %1996 = vset.pattern.permute.xlu1 %v2483_v8 }
 0x124   :  { %624 = vperm.xlu1 %1996, %v159_v32  }
 0x125   :  { %v2742_v36 = vpop.permute.xlu1 %376  ;;  %v2744_v37 = vpop.permute.xlu0 %384  ;;  %464 = vperm.xlu0 %2013, %v2739_v35  }
 0x126   :  { %v507_v19 = vmul.f32 %v2798_v10, %v2742_v36 }
 0x128   :  { %628 = vperm.xlu1 %1996, %v160_v33  }
 0x129   :  { %v2747_v38 = vpop.permute.xlu1 %380  ;;  %v2749_v39 = vpop.permute.xlu0 %396  ;;  %480 = vperm.xlu0 %2013, %v2721_v30  }
 0x12a   :  { %v508_v27 = vmul.f32 %v2798_v10, %v2747_v38  ;;  %v512_v33 = vmul.f32 %v2798_v10, %v2749_v39 }
 0x12c   :  { %1997 = vset.pattern.permute.xlu1 %v2482_v7 }
 0x12d   :  { %261 = vperm.xlu1 %1997, %v162_v40   ;;  %v2755_v42 = vpop.permute.xlu0 %400  ;;  %492 = vperm.xlu0 %2013, %v2752_v41  }
 0x12e   :  { %v197_v43 = vpop.permute.xlu1 %196 }
 0x131   :  { %1998 = vset.pattern.permute.xlu1 %v2481_v0  ;;  %496 = vperm.xlu0 %2013, %v2758_v44  }
 0x132   :  { %440 = vperm.xlu1 %1998, %v162_v40   ;;  %v577_v45 = vpop.permute.xlu0 %576 }
 0x133   :  { %v389_v46 = vpop.permute.xlu1 %388  ;;  %v704_v28 = vmul.f32 %v2802_v13, %v577_v45  ;;  %v513_v45 = vmul.f32 %v2798_v10, %v2755_v42 }
 0x135   :  { %2018 = vset.pattern.permute.xlu0 %v2483_v8 }
 0x136   :  { %444 = vperm.xlu1 %1998, %v2689_v14   ;;  %v2764_v47 = vpop.permute.xlu0 %588  ;;  %684 = vperm.xlu0 %2018, %v2724_v31   ;;  %v510_v14 = vmul.f32 %v2798_v10, %v389_v46  ;;  %v509_v46 = vmul.f32 %v2798_v10, %v2744_v37 }
 0x138   :  { %v573_v48 = vpop.permute.xlu1 %572 }
 0x139   :  { %v703_v23 = vmul.f32 %v2802_v13, %v573_v48  ;;  %v2823_v48 = vld [vmem:[#allocation7] ss:$0 sm:$0xff] }
 0x13a   :  { %1999 = vset.pattern.permute.xlu1 %v2482_v7  ;;  %v2770_v51 = vpop.permute.xlu0 %600  ;;  %696 = vperm.xlu0 %2018, %v2767_v50  }
 0x13b   :  { %276 = vperm.xlu1 %1999, %v165_v49   ;;  %v710_v42 = vmul.f32 %v2802_v13, %v2770_v51 }
 0x13c   :  { %v2773_v52 = vpop.permute.xlu1 %580 }
 0x13e   :  { %v2775_v53 = vpop.permute.xlu0 %608 }
 0x13f   :  { %2000 = vset.pattern.permute.xlu1 %v2481_v0 }
 0x140   :  { %452 = vperm.xlu1 %2000, %v165_v49   ;;  %v585_v54 = vpop.permute.xlu1 %584 }
 0x141   :  { %v706_v21 = vmul.f32 %v2802_v13, %v585_v54 }
 0x142   :  { %v2778_v55 = vpop.permute.xlu0 %620 }
 0x144   :  { %2001 = vset.pattern.permute.xlu1 %v2483_v8 }
 0x145   :  { %636 = vperm.xlu1 %2001, %v162_v40   ;;  %v207_v56 = vpop.permute.xlu1 %206 }
 0x146   :  { %v2781_v57 = vpop.permute.xlu0 %632  ;;  %v348_v40 = vmul.f32 %v2800_v12, %v207_v56  ;;  %v707_v56 = vmul.f32 %v2802_v13, %v2764_v47 }
 0x148   :  { %v544_v5 = vadd.f32 %v512_v33, %v348_v40 }
 0x149   :  { %644 = vperm.xlu1 %2001, %v2715_v29  }
 0x14a   :  { %v2784_v58 = vpop.permute.xlu1 %392  ;;  %v2786_v59 = vpop.permute.xlu0 %640 }
 0x14d   :  { %648 = vperm.xlu1 %2001, %v165_v49  }
 0x14e   :  { %v2788_v61 = vpop.permute.xlu0 %652 }
 0x14f   :  { %v212_v62 = vpop.permute.xlu1 %211 }
 0x150   :  { %v349_v49 = vmul.f32 %v2800_v12, %v212_v62  ;;  %v705_v62 = vmul.f32 %v2802_v13, %v2773_v52 }
 0x151   :  { %2002 = vset.pattern.permute.xlu1 %v2482_v7 }
 0x152   :  { %286 = vperm.xlu1 %2002, %v2735_v34   ;;  %v2792_v1 = vpop.permute.xlu0 %664  ;;  %v545_v51 = vadd.f32 %v513_v45, %v349_v49 }
 0x153   :  { %v217_v2 = vpop.permute.xlu1 %216 }
 0x154   :  { %v350_v47 = vmul.f32 %v2800_v12, %v217_v2 }
 0x156   :  { %2003 = vset.pattern.permute.xlu1 %v2481_v0  ;;  %v2795_v9 = vpop.permute.xlu0 %672 }
 0x157   :  { %456 = vperm.xlu1 %2003, %v2693_v15   ;;  %v346_v15 = vmul.f32 %v2800_v12, %v197_v43 }
 0x158   :  { %v405_v11 = vpop.permute.xlu1 %404 }
 0x159   :  { %v542_v25 = vadd.f32 %v510_v14, %v346_v15  ;;  %v514_v63 = vmul.f32 %v2798_v10, %v405_v11 }
 0x15b   :  { %v182_v18 = vpop.permute.xlu0 %181  ;;  %2004 = vset.pattern.permute.xlu1 %v2482_v7  ;;  %v738_v36 = vadd.f32 %v706_v21, %v542_v25  ;;  %v546_v15 = vadd.f32 %v514_v63, %v350_v47  ;;  %v712_v63 = vmul.f32 %v2802_v13, %v2775_v53 }
 0x15c   :  { %v343_v20 = vmul.f32 %v2800_v12, %v182_v18  ;;  %291 = vperm.xlu1 %2004, %v2739_v35  }
 0x15d   :  { %v593_v22 = vpop.permute.xlu1 %592  ;;  %v777_v4 = vadd.f32 %v2823_v48, %v738_v36  ;;  %v170_v36 = vld [vmem:[#allocation2 + $0xc0] sm:$0xff] }
 0x15e   :  { %v539_v24 = vadd.f32 %v507_v19, %v343_v20  ;;  %v708_v60 = vmul.f32 %v2802_v13, %v593_v22  ;;  %v511_v19 = vmul.f32 %v2798_v10, %v2784_v58 }
 0x15f   :  { %v187_v26 = vpop.permute.xlu0 %186 }
 0x160   :  { %v735_v29 = vadd.f32 %v703_v23, %v539_v24  ;;  %v344_v32 = vmul.f32 %v2800_v12, %v187_v26  ;;  %296 = vperm.xlu1 %2004, %v2697_v16   ;;  %v740_v20 = vadd.f32 %v708_v60, %v544_v5  ;;  %v742_v26 = vadd.f32 %v710_v42, %v546_v15 }
 0x161   :  { %v597_v43 = vpop.permute.xlu1 %596 }
 0x162   :  { %v540_v38 = vadd.f32 %v508_v27, %v344_v32  ;;  %v774_v54 = vadd.f32 %v2823_v48, %v735_v29  ;;  %v709_v11 = vmul.f32 %v2802_v13, %v597_v43  ;;  %v779_v58 = vadd.f32 %v2823_v48, %v740_v20 }
 0x163   :  { %v192_v39 = vpop.permute.xlu0 %191 }
 0x164   :  { %v736_v3 = vadd.f32 %v704_v28, %v540_v38  ;;  %v345_v37 = vmul.f32 %v2800_v12, %v192_v39  ;;  %2005 = vset.pattern.permute.xlu1 %v2481_v0  ;;  %2044 = vtanh.f32 %v774_v54  ;;  %v741_v2 = vadd.f32 %v709_v11, %v545_v51  ;;  %v173_v51 = vld [vmem:[#allocation2 + $0xd8] sm:$0xff] }
 0x165   :  { %468 = vperm.xlu1 %2005, %v2697_v16  }
 0x166   :  { %v775_v6 = vadd.f32 %v2823_v48, %v736_v3  ;;  %v541_v14 = vadd.f32 %v509_v46, %v345_v37  ;;  %v222_v18 = vpop.permute.xlu1 %221  ;;  %v780_v28 = vadd.f32 %v2823_v48, %v741_v2 }
 0x167   :  { %v202_v52 = vpop.permute.xlu0 %201 }
 0x168   :  { %2046 = vtanh.f32 %v775_v6  ;;  %v737_v21 = vadd.f32 %v705_v62, %v541_v14  ;;  %v347_v16 = vmul.f32 %v2800_v12, %v202_v52  ;;  %v351_v14 = vmul.f32 %v2800_v12, %v222_v18 }
 0x169   :  { %2006 = vset.pattern.permute.xlu1 %v2483_v8  ;;  %2048 = vtanh.f32 %v777_v4 }
 0x16a   :  { %v776_v22 = vadd.f32 %v2823_v48, %v737_v21  ;;  %v543_v23 = vadd.f32 %v511_v19, %v347_v16  ;;  %656 = vperm.xlu1 %2006, %v2735_v34   ;;  %v781_v34 = vadd.f32 %v2823_v48, %v742_v26 }
 0x16b   :  { %v409_v24 = vpop.permute.xlu1 %408  ;;  %v227_v25 = vpop.permute.xlu0 %226 }
 0x16c   :  { %2050 = vtanh.f32 %v776_v22  ;;  %v739_v27 = vadd.f32 %v707_v56, %v543_v23  ;;  %v515_v4 = vmul.f32 %v2798_v10, %v409_v24 }
 0x16d   :  { %2052 = vtanh.f32 %v779_v58 }
 0x16e   :  { %v778_v29 = vadd.f32 %v2823_v48, %v739_v27  ;;  %660 = vperm.xlu1 %2006, %v2739_v35   ;;  %v2045_v40 = vpop.eup %2044  ;;  %v352_v35 = vmul.f32 %v2800_v12, %v227_v25  ;;  %v547_v20 = vadd.f32 %v515_v4, %v351_v14  ;;  %v718_v14 = vmul.f32 %v2802_v13, %v2781_v57 }
 0x16f   :  { %v413_v32 = vpop.permute.xlu1 %412  ;;  %v2854_v33 = vpop.permute.xlu0 %231 }
 0x170   :  { %2054 = vtanh.f32 %v778_v29  ;;  %v516_v45 = vmul.f32 %v2798_v10, %v413_v32 }
 0x171   :  { %2056 = vtanh.f32 %v780_v28 }
 0x172   :  { %v2047_v43 = vpop.eup %2046  ;;  %2007 = vset.pattern.permute.xlu1 %v2482_v7  ;;  %2058 = vtanh.f32 %v781_v34  ;;  %v548_v3 = vadd.f32 %v516_v45, %v352_v35 }
 0x173   :  { %301 = vperm.xlu1 %2007, %v170_v36   ;;  %v2858_v46 = vpop.permute.xlu0 %241  ;;  %v838_v38 = vpack.c.bf16 %v2047_v43, %v2045_v40  ;;  %v2049_v54 = vpop.eup %2048  ;;  %v353_v40 = vmul.f32 %v2800_v12, %v2854_v33 }
 0x174   :  { %v237_v49 = vpop.permute.xlu1 %236  ;;  %v744_v11 = vadd.f32 %v712_v63, %v548_v3 }
 0x175   :  { %1815 = vmatprep.mubr.bf16.mxu0 %v838_v38  ;;  %v354_v27 = vmul.f32 %v2800_v12, %v237_v49 }
 0x176   :  { %v2051_v60 = vpop.eup %2050  ;;  %v783_v16 = vadd.f32 %v2823_v48, %v744_v11 }
 0x177   :  { %2008 = vset.pattern.permute.xlu1 %v2481_v0  ;;  %v2863_v39 = vpop.permute.xlu0 %266  ;;  %v839_v56 = vpack.c.bf16 %v2049_v54, %v2051_v60  ;;  %v2053_v37 = vpop.eup %2052 }
 0x178   :  { %472 = vperm.xlu1 %2008, %v170_v36   ;;  %2060 = vtanh.f32 %v783_v16 }
 0x179   :  { %1816 = vmatmul.mubr.bf16.vlgmr.msra.gmra.mrb[0].mxu0 %v839_v56  ;;  %v421_v42 = vpop.permute.xlu1 %420 }
 0x17a   :  { %v2055_v62 = vpop.eup %2054  ;;  %v518_v24 = vmul.f32 %v2798_v10, %v421_v42 }
 0x17b   :  { %v2868_v5 = vpop.permute.xlu0 %271  ;;  %v840_v47 = vpack.c.bf16 %v2053_v37, %v2055_v62  ;;  %v2057_v6 = vpop.eup %2056  ;;  %v715_v62 = vmul.f32 %v2802_v13, %v2778_v55 }
 0x17c   :  { %476 = vperm.xlu1 %2008, %v2700_v17   ;;  %v2059_v19 = vpop.eup %2058  ;;  %v550_v32 = vadd.f32 %v518_v24, %v354_v27 }
 0x17d   :  { %1819 = vmatprep.mubr.bf16.mxu0 %v840_v47  ;;  %v841_v21 = vpack.c.bf16 %v2059_v19, %v2057_v6 }
 0x17e   :  { %v605_v53 = vpop.permute.xlu1 %604 }
 0x17f   :  { %v711_v52 = vmul.f32 %v2802_v13, %v605_v53  ;;  %v2873_v15 = vpop.permute.xlu0 %281 }
 0x180   :  { %2009 = vset.pattern.permute.xlu1 %v2482_v7 }
 0x181   :  { %v743_v2 = vadd.f32 %v711_v52, %v547_v20  ;;  %316 = vperm.xlu1 %2009, %v173_v51   ;;  %1820 = vmatmul.mubr.bf16.gmra.mrb[4].mxu0 %v841_v21 }
 0x182   :  { %v613_v17 = vpop.permute.xlu1 %612  ;;  %v2061_v29 = vpop.eup %2060 }
 0x183   :  { %v782_v18 = vadd.f32 %v2823_v48, %v743_v2  ;;  %v2878_v22 = vpop.permute.xlu0 %306  ;;  %v713_v54 = vmul.f32 %v2802_v13, %v613_v17 }
 0x185   :  { %2062 = vtanh.f32 %v782_v18  ;;  %2010 = vset.pattern.permute.xlu1 %v2481_v0 }
 0x186   :  { %484 = vperm.xlu1 %2010, %v173_v51   ;;  %v617_v23 = vpop.permute.xlu1 %616 }
 0x187   :  { %v2881_v58 = vpop.permute.xlu0 %311  ;;  %v714_v28 = vmul.f32 %v2802_v13, %v617_v23 }
 0x189   :  { %v746_v43 = vadd.f32 %v714_v28, %v550_v32 }
 0x18a   :  { %2011 = vset.pattern.permute.xlu1 %v2483_v8 }
 0x18b   :  { %668 = vperm.xlu1 %2011, %v170_v36   ;;  %v247_v25 = vpop.permute.xlu1 %246  ;;  %v2885_v26 = vpop.permute.xlu0 %321  ;;  %v785_v60 = vadd.f32 %v2823_v48, %v746_v43 }
 0x18c   :  { %v356_v55 = vmul.f32 %v2800_v12, %v247_v25 }
 0x18d   :  { %2064 = vtanh.f32 %v785_v60 }
 0x18f   :  { %v2063_v34 = vpop.eup %2062  ;;  %676 = vperm.xlu1 %2011, %v2721_v30   ;;  %v355_v30 = vmul.f32 %v2800_v12, %v2858_v46 }
 0x190   :  { %v417_v38 = vpop.permute.xlu0 %416  ;;  %v425_v35 = vpop.permute.xlu1 %424  ;;  %v842_v45 = vpack.c.bf16 %v2061_v29, %v2063_v34 }
 0x191   :  { %v517_v36 = vmul.f32 %v2798_v10, %v417_v38  ;;  %v519_v33 = vmul.f32 %v2798_v10, %v425_v35 }
 0x192   :  { %1823 = vmatprep.mubr.bf16.mxu0 %v842_v45  ;;  %v360_v45 = vmul.f32 %v2800_v12, %v2863_v39 }
 0x193   :  { %v549_v49 = vadd.f32 %v517_v36, %v353_v40  ;;  %680 = vperm.xlu1 %2011, %v173_v51   ;;  %v551_v4 = vadd.f32 %v519_v33, %v355_v30  ;;  %v361_v33 = vmul.f32 %v2800_v12, %v2868_v5 }
 0x194   :  { %v429_v42 = vpop.permute.xlu0 %428 }
 0x195   :  { %v745_v56 = vadd.f32 %v713_v54, %v549_v49  ;;  %v252_v63 = vpop.permute.xlu1 %251  ;;  %v520_v46 = vmul.f32 %v2798_v10, %v429_v42  ;;  %v747_v19 = vadd.f32 %v715_v62, %v551_v4 }
 0x196   :  { %v357_v23 = vmul.f32 %v2800_v12, %v252_v63 }
 0x197   :  { %v784_v3 = vadd.f32 %v2823_v48, %v745_v56  ;;  %2014 = vset.pattern.permute.xlu1 %v2482_v7  ;;  %v2065_v20 = vpop.eup %2064  ;;  %v552_v21 = vadd.f32 %v520_v46, %v356_v55  ;;  %v786_v57 = vadd.f32 %v2823_v48, %v747_v19 }
 0x198   :  { %326 = vperm.xlu1 %2014, %v2752_v41   ;;  %v433_v53 = vpop.permute.xlu0 %432 }
 0x199   :  { %2066 = vtanh.f32 %v784_v3  ;;  %v257_v37 = vpop.permute.xlu1 %256  ;;  %v521_v16 = vmul.f32 %v2798_v10, %v433_v53  ;;  %v2028_v3 = vld [vmem:[#allocation11] sm:$0xff]  }
 0x19a   :  { %v358_v6 = vmul.f32 %v2800_v12, %v257_v37  ;;  %2068 = vtanh.f32 %v786_v57  ;;  %1847 = vmatprep.subr.bf16.mxu1 %v2028_v3 }
 0x19b   :  { %v553_v25 = vadd.f32 %v521_v16, %v357_v23 }
 0x19c   :  { %2015 = vset.pattern.permute.xlu1 %v2481_v0  ;;  %v449_v30 = vpop.permute.xlu0 %448 }
 0x19d   :  { %488 = vperm.xlu1 %2015, %v2724_v31   ;;  %v525_v42 = vmul.f32 %v2798_v10, %v449_v30  ;;  %v2032_v30 = vld [vmem:[#allocation11 + $0x20] sm:$0xff]  }
 0x19e   :  { %v437_v47 = vpop.permute.xlu1 %436 }
 0x19f   :  { %v522_v11 = vmul.f32 %v2798_v10, %v437_v47 }
 0x1a1   :  { %v554_v51 = vadd.f32 %v522_v11, %v358_v6  ;;  %2016 = vset.pattern.permute.xlu1 %v2482_v7  ;;  %v557_v11 = vadd.f32 %v525_v42, %v361_v33 }
 0x1a2   :  { %331 = vperm.xlu1 %2016, %v2758_v44  }
 0x1a3   :  { %v2067_v31 = vpop.eup %2066  ;;  %v625_v52 = vpop.permute.xlu1 %624  ;;  %v750_v18 = vadd.f32 %v718_v14, %v554_v51 }
 0x1a4   :  { %v716_v2 = vmul.f32 %v2802_v13, %v625_v52  ;;  %v843_v17 = vpack.c.bf16 %v2065_v20, %v2067_v31  ;;  %v2069_v38 = vpop.eup %2068 }
 0x1a5   :  { %v789_v29 = vadd.f32 %v2823_v48, %v750_v18 }
 0x1a6   :  { %v748_v24 = vadd.f32 %v716_v2, %v552_v21  ;;  %336 = vperm.xlu1 %2016, %v2767_v50   ;;  %1824 = vmatmul.mubr.bf16.gmra.mrb[8].mxu0 %v843_v17 }
 0x1a7   :  { %v629_v7 = vpop.permute.xlu1 %628 }
 0x1a8   :  { %v787_v27 = vadd.f32 %v2823_v48, %v748_v24  ;;  %v717_v28 = vmul.f32 %v2802_v13, %v629_v7  ;;  %v363_v24 = vmul.f32 %v2800_v12, %v2873_v15 }
 0x1aa   :  { %2070 = vtanh.f32 %v787_v27  ;;  %v749_v32 = vadd.f32 %v717_v28, %v553_v25  ;;  %2017 = vset.pattern.permute.xlu1 %v2481_v0  ;;  %v723_v25 = vmul.f32 %v2802_v13, %v2788_v61 }
 0x1ab   :  { %500 = vperm.xlu1 %2017, %v2767_v50   ;;  %2072 = vtanh.f32 %v789_v29 }
 0x1ac   :  { %v788_v34 = vadd.f32 %v2823_v48, %v749_v32  ;;  %v262_v40 = vpop.permute.xlu1 %261 }
 0x1ad   :  { %v359_v37 = vmul.f32 %v2800_v12, %v262_v40 }
 0x1ae   :  { %2074 = vtanh.f32 %v788_v34 }
 0x1af   :  { %2019 = vset.pattern.permute.xlu1 %v2483_v8  ;;  %v720_v8 = vmul.f32 %v2802_v13, %v2786_v59 }
 0x1b0   :  { %688 = vperm.xlu1 %2019, %v2752_v41  }
 0x1b1   :  { %v441_v43 = vpop.permute.xlu1 %440 }
 0x1b4   :  { %v2071_v35 = vpop.eup %2070  ;;  %692 = vperm.xlu1 %2019, %v2758_v44   ;;  %v523_v44 = vmul.f32 %v2798_v10, %v441_v43  ;;  %v2029_v43 = vld [vmem:[#allocation11 + $0x8] sm:$0xff]  }
 0x1b5   :  { %v445_v0 = vpop.permute.xlu1 %444  ;;  %v844_v36 = vpack.c.bf16 %v2071_v35, %v2069_v38  ;;  %v2073_v54 = vpop.eup %2072  ;;  %v2030_v35 = vld [vmem:[#allocation11 + $0x10] sm:$0xff]  }
 0x1b6   :  { %v524_v50 = vmul.f32 %v2798_v10, %v445_v0  ;;  %v555_v59 = vadd.f32 %v523_v44, %v359_v37 }
 0x1b7   :  { %1827 = vmatprep.mubr.bf16.mxu0 %v844_v36 }
 0x1b8   :  { %v2075_v49 = vpop.eup %2074  ;;  %v556_v60 = vadd.f32 %v524_v50, %v360_v45  ;;  %v461_v45 = vpop.permute.xlu0 %460 }
 0x1b9   :  { %v845_v41 = vpack.c.bf16 %v2073_v54, %v2075_v49  ;;  %v528_v61 = vmul.f32 %v2798_v10, %v461_v45  ;;  %v2031_v54 = vld [vmem:[#allocation11 + $0x18] sm:$0xff]  }
 0x1ba   :  { %v752_v56 = vadd.f32 %v720_v8, %v556_v60  ;;  %v277_v63 = vpop.permute.xlu1 %276  ;;  %v726_v8 = vmul.f32 %v2802_v13, %v2792_v1 }
 0x1bb   :  { %1828 = vmatmul.mubr.bf16.gmra.mrb[12].mxu0 %v845_v41  ;;  %v362_v5 = vmul.f32 %v2800_v12, %v277_v63 }
 0x1bc   :  { %v791_v47 = vadd.f32 %v2823_v48, %v752_v56  ;;  %v465_v60 = vpop.permute.xlu0 %464 }
 0x1bd   :  { %v529_v56 = vmul.f32 %v2798_v10, %v465_v60 }
 0x1be   :  { %2076 = vtanh.f32 %v791_v47 }
 0x1bf   :  { %v453_v39 = vpop.permute.xlu1 %452 }
 0x1c0   :  { %v526_v14 = vmul.f32 %v2798_v10, %v453_v39 }
 0x1c2   :  { %v558_v55 = vadd.f32 %v526_v14, %v362_v5  ;;  %v2034_v14 = vld [vmem:[#allocation11 + $0x30] sm:$0xff]  }
 0x1c4   :  { %v637_v62 = vpop.permute.xlu1 %636 }
 0x1c5   :  { %v719_v4 = vmul.f32 %v2802_v13, %v637_v62 }
 0x1c7   :  { %v751_v6 = vadd.f32 %v719_v4, %v555_v59  ;;  %v2033_v4 = vld [vmem:[#allocation11 + $0x28] sm:$0xff]  }
 0x1c8   :  { %v645_v46 = vpop.permute.xlu1 %644  ;;  %v2077_v17 = vpop.eup %2076 }
 0x1c9   :  { %v790_v19 = vadd.f32 %v2823_v48, %v751_v6  ;;  %v721_v53 = vmul.f32 %v2802_v13, %v645_v46 }
 0x1cb   :  { %2078 = vtanh.f32 %v790_v19  ;;  %v753_v51 = vadd.f32 %v721_v53, %v557_v11  ;;  %v2035_v19 = vld [vmem:[#allocation11 + $0x38] sm:$0xff]  }
 0x1cc   :  { %v649_v20 = vpop.permute.xlu1 %648 }
 0x1cd   :  { %v722_v31 = vmul.f32 %v2802_v13, %v649_v20  ;;  %v792_v52 = vadd.f32 %v2823_v48, %v753_v51 }
 0x1cf   :  { %v754_v21 = vadd.f32 %v722_v31, %v558_v55  ;;  %2080 = vtanh.f32 %v792_v52  ;;  %v368_v31 = vmul.f32 %v2800_v12, %v2878_v22 }
 0x1d1   :  { %v793_v16 = vadd.f32 %v2823_v48, %v754_v21  ;;  %v287_v2 = vpop.permute.xlu1 %286 }
 0x1d2   :  { %v364_v50 = vmul.f32 %v2800_v12, %v287_v2  ;;  %v728_v2 = vmul.f32 %v2802_v13, %v2795_v9 }
 0x1d3   :  { %2082 = vtanh.f32 %v793_v16 }
 0x1d4   :  { %v560_v63 = vadd.f32 %v528_v61, %v364_v50 }
 0x1d5   :  { %v2079_v57 = vpop.eup %2078 }
 0x1d6   :  { %v457_v18 = vpop.permute.xlu1 %456  ;;  %v846_v23 = vpack.c.bf16 %v2077_v17, %v2079_v57 }
 0x1d7   :  { %v527_v7 = vmul.f32 %v2798_v10, %v457_v18 }
 0x1d8   :  { %1831 = vmatprep.mubr.bf16.mxu1 %v846_v23 }
 0x1d9   :  { %v559_v27 = vadd.f32 %v527_v7, %v363_v24  ;;  %v2081_v32 = vpop.eup %2080 }
 0x1db   :  { %v755_v28 = vadd.f32 %v723_v25, %v559_v27  ;;  %v292_v29 = vpop.permute.xlu1 %291  ;;  %v481_v25 = vpop.permute.xlu0 %480 }
 0x1dd   :  { %v2083_v34 = vpop.eup %2082  ;;  %v794_v44 = vadd.f32 %v2823_v48, %v755_v28  ;;  %v369_v28 = vmul.f32 %v2800_v12, %v2881_v58 }
 0x1de   :  { %v847_v40 = vpack.c.bf16 %v2083_v34, %v2081_v32 }
 0x1df   :  { %v297_v38 = vpop.permute.xlu1 %296  ;;  %2084 = vtanh.f32 %v794_v44 }
 0x1e0   :  { %1832 = vmatmul.mubr.bf16.vlgmr.msra.gmra.mrb[0].mxu1 %v847_v40  ;;  %v366_v0 = vmul.f32 %v2800_v12, %v297_v38 }
 0x1e1   :  { %1848 = vmatpush3.bf16.msra.mxu1 %v2028_v3  ;;  %v365_v3 = vmul.f32 %v2800_v12, %v292_v29  ;;  %v533_v29 = vmul.f32 %v2798_v10, %v481_v25 }
 0x1e2   :  { %1849 = vmatprep.subr.bf16.mxu1 %v2029_v43 }
 0x1e3   :  { %v561_v62 = vadd.f32 %v529_v56, %v365_v3  ;;  %v565_v38 = vadd.f32 %v533_v29, %v369_v28 }
 0x1e4   :  { %v469_v15 = vpop.permute.xlu1 %468 }
 0x1e5   :  { %v530_v36 = vmul.f32 %v2798_v10, %v469_v15  ;;  %1850 = vmatpush3.bf16.msra.mxu1 %v2029_v43 }
 0x1e6   :  { %1851 = vmatprep.subr.bf16.mxu1 %v2030_v35 }
 0x1e7   :  { %v562_v49 = vadd.f32 %v530_v36, %v366_v0 }
 0x1e9   :  { %v657_v41 = vpop.permute.xlu1 %656  ;;  %1852 = vmatpush3.bf16.msra.mxu1 %v2030_v35  ;;  %v758_v33 = vadd.f32 %v726_v8, %v562_v49  ;;  %v2085_v5 = vpop.eup %2084 }
 0x1ea   :  { %v724_v39 = vmul.f32 %v2802_v13, %v657_v41  ;;  %1853 = vmatprep.subr.bf16.mxu1 %v2031_v54 }
 0x1eb   :  { %v797_v47 = vadd.f32 %v2823_v48, %v758_v33 }
 0x1ec   :  { %v756_v37 = vadd.f32 %v724_v39, %v560_v63  ;;  %v493_v63 = vpop.permute.xlu0 %492 }
 0x1ed   :  { %v661_v42 = vpop.permute.xlu1 %660  ;;  %1854 = vmatpush3.bf16.msra.mxu1 %v2031_v54 }
 0x1ee   :  { %v795_v1 = vadd.f32 %v2823_v48, %v756_v37  ;;  %v725_v59 = vmul.f32 %v2802_v13, %v661_v42  ;;  %1855 = vmatprep.subr.bf16.mxu1 %v2032_v30 }
 0x1f0   :  { %2086 = vtanh.f32 %v795_v1  ;;  %v757_v6 = vadd.f32 %v725_v59, %v561_v62  ;;  %v497_v33 = vpop.permute.xlu0 %496 }
 0x1f1   :  { %1856 = vmatpush3.bf16.msra.mxu1 %v2032_v30  ;;  %2088 = vtanh.f32 %v797_v47 }
 0x1f2   :  { %v796_v11 = vadd.f32 %v2823_v48, %v757_v6  ;;  %v302_v46 = vpop.permute.xlu1 %301  ;;  %1857 = vmatprep.subr.bf16.mxu1 %v2033_v4 }
 0x1f3   :  { %v367_v22 = vmul.f32 %v2800_v12, %v302_v46 }
 0x1f4   :  { %2090 = vtanh.f32 %v796_v11  ;;  %v685_v59 = vpop.permute.xlu0 %684 }
 0x1f5   :  { %1858 = vmatpush3.bf16.msra.mxu1 %v2033_v4  ;;  %v371_v4 = vmul.f32 %v2800_v12, %v2885_v26  ;;  %v731_v6 = vmul.f32 %v2802_v13, %v685_v59 }
 0x1f6   :  { %1859 = vmatprep.subr.bf16.mxu1 %v2034_v14 }
 0x1f7   :  { %v473_v53 = vpop.permute.xlu1 %472 }
 0x1f8   :  { %v531_v7 = vmul.f32 %v2798_v10, %v473_v53  ;;  %v697_v46 = vpop.permute.xlu0 %696 }
 0x1f9   :  { %1860 = vmatpush3.bf16.msra.mxu1 %v2034_v14 }
 0x1fa   :  { %v2087_v51 = vpop.eup %2086  ;;  %1861 = vmatprep.subr.bf16.mxu1 %v2035_v19  ;;  %v563_v32 = vadd.f32 %v531_v7, %v367_v22 }
 0x1fb   :  { %v477_v20 = vpop.permute.xlu1 %476  ;;  %v848_v55 = vpack.c.bf16 %v2087_v51, %v2085_v5  ;;  %v2089_v21 = vpop.eup %2088 }
 0x1fc   :  { %v532_v52 = vmul.f32 %v2798_v10, %v477_v20  ;;  %v734_v20 = vmul.f32 %v2802_v13, %v697_v46 }
 0x1fd   :  { %1835 = vmatprep.mubr.bf16.mxu1 %v848_v55  ;;  %1862 = vmatpush3.bf16.msra.mxu1 %v2035_v19  ;;  %v536_v55 = vmul.f32 %v2798_v10, %v493_v63 }
 0x1fe   :  { %v2091_v16 = vpop.eup %2090  ;;  %v564_v17 = vadd.f32 %v532_v52, %v368_v31 }
 0x1ff   :  { %v849_v57 = vpack.c.bf16 %v2089_v21, %v2091_v16 }
 0x200   :  { %v760_v18 = vadd.f32 %v728_v2, %v564_v17  ;;  %v317_v23 = vpop.permute.xlu1 %316  ;;  %v537_v17 = vmul.f32 %v2798_v10, %v497_v33 }
 0x201   :  { %1836 = vmatmul.mubr.bf16.gmra.mrb[4].mxu1 %v849_v57  ;;  %v370_v0 = vmul.f32 %v2800_v12, %v317_v23 }
 0x202   :  { %v799_v34 = vadd.f32 %v2823_v48, %v760_v18 }
 0x204   :  { %2092 = vtanh.f32 %v799_v34  ;;  %v3001_v34 = vld [vmem:[#allocation10] ss:$0 sm:$0xff] }
 0x205   :  { %v485_v24 = vpop.permute.xlu1 %484 }
 0x206   :  { %v534_v35 = vmul.f32 %v2798_v10, %v485_v24 }
 0x208   :  { %v566_v61 = vadd.f32 %v534_v35, %v370_v0 }
 0x20a   :  { %v669_v27 = vpop.permute.xlu1 %668 }
 0x20b   :  { %v727_v9 = vmul.f32 %v2802_v13, %v669_v27 }
 0x20d   :  { %v759_v40 = vadd.f32 %v727_v9, %v563_v32 }
 0x20e   :  { %v677_v43 = vpop.permute.xlu1 %676  ;;  %v2093_v41 = vpop.eup %2092 }
 0x20f   :  { %v798_v45 = vadd.f32 %v2823_v48, %v759_v40  ;;  %v729_v15 = vmul.f32 %v2802_v13, %v677_v43 }
 0x211   :  { %2094 = vtanh.f32 %v798_v45  ;;  %v761_v58 = vadd.f32 %v729_v15, %v565_v38 }
 0x212   :  { %v681_v36 = vpop.permute.xlu1 %680 }
 0x213   :  { %v730_v50 = vmul.f32 %v2802_v13, %v681_v36  ;;  %v800_v54 = vadd.f32 %v2823_v48, %v761_v58 }
 0x215   :  { %v762_v49 = vadd.f32 %v730_v50, %v566_v61  ;;  %2096 = vtanh.f32 %v800_v54 }
 0x217   :  { %v801_v8 = vadd.f32 %v2823_v48, %v762_v49  ;;  %v327_v60 = vpop.permute.xlu1 %326 }
 0x218   :  { %v372_v53 = vmul.f32 %v2800_v12, %v327_v60 }
 0x219   :  { %2098 = vtanh.f32 %v801_v8 }
 0x21a   :  { %v568_v52 = vadd.f32 %v536_v55, %v372_v53 }
 0x21b   :  { %v2095_v56 = vpop.eup %2094 }
 0x21c   :  { %v489_v3 = vpop.permute.xlu1 %488  ;;  %v850_v39 = vpack.c.bf16 %v2093_v41, %v2095_v56 }
 0x21d   :  { %v535_v62 = vmul.f32 %v2798_v10, %v489_v3 }
 0x21e   :  { %1839 = vmatprep.mubr.bf16.mxu1 %v850_v39 }
 0x21f   :  { %v2097_v44 = vpop.eup %2096  ;;  %v567_v47 = vadd.f32 %v535_v62, %v371_v4 }
 0x221   :  { %v332_v30 = vpop.permute.xlu1 %331  ;;  %v763_v5 = vadd.f32 %v731_v6, %v567_v47 }
 0x222   :  { %v373_v26 = vmul.f32 %v2800_v12, %v332_v30 }
 0x223   :  { %v2099_v37 = vpop.eup %2098  ;;  %v802_v16 = vadd.f32 %v2823_v48, %v763_v5 }
 0x224   :  { %v851_v42 = vpack.c.bf16 %v2099_v37, %v2097_v44  ;;  %v569_v23 = vadd.f32 %v537_v17, %v373_v26 }
 0x225   :  { %v337_v1 = vpop.permute.xlu1 %336  ;;  %2100 = vtanh.f32 %v802_v16 }
 0x226   :  { %1840 = vmatmul.mubr.bf16.gmra.mrb[8].mxu1 %v851_v42  ;;  %v374_v14 = vmul.f32 %v2800_v12, %v337_v1 }
 0x22a   :  { %v501_v11 = vpop.permute.xlu1 %500 }
 0x22b   :  { %v538_v19 = vmul.f32 %v2798_v10, %v501_v11 }
 0x22d   :  { %v570_v51 = vadd.f32 %v538_v19, %v374_v14 }
 0x22f   :  { %v689_v31 = vpop.permute.xlu1 %688  ;;  %v766_v2 = vadd.f32 %v734_v20, %v570_v51  ;;  %v2101_v27 = vpop.eup %2100 }
 0x230   :  { %v732_v21 = vmul.f32 %v2802_v13, %v689_v31 }
 0x231   :  { %v805_v25 = vadd.f32 %v2823_v48, %v766_v2 }
 0x232   :  { %v764_v57 = vadd.f32 %v732_v21, %v568_v52 }
 0x233   :  { %v693_v18 = vpop.permute.xlu1 %692 }
 0x234   :  { %v803_v24 = vadd.f32 %v2823_v48, %v764_v57  ;;  %v733_v7 = vmul.f32 %v2802_v13, %v693_v18 }
 0x236   :  { %2102 = vtanh.f32 %v803_v24  ;;  %v765_v22 = vadd.f32 %v733_v7, %v569_v23 }
 0x237   :  { %2104 = vtanh.f32 %v805_v25 }
 0x238   :  { %v804_v12 = vadd.f32 %v2823_v48, %v765_v22 }
 0x23a   :  { %2106 = vtanh.f32 %v804_v12  ;;  %v2036_v12 = vld [vmem:[#allocation14] sm:$0xff]  }
 0x23b   :  { %1895 = vmatprep.subr.bf16.mxu0 %v2036_v12 }
 0x23c   :  { %1896 = vmatpush3.bf16.msra.mxu0 %v2036_v12 }
 0x240   :  { %v2103_v28 = vpop.eup %2102 }
 0x241   :  { %v852_v29 = vpack.c.bf16 %v2103_v28, %v2101_v27  ;;  %v2105_v10 = vpop.eup %2104  ;;  %v2037_v27 = vld [vmem:[#allocation14 + $0x8] sm:$0xff]   ;;  %v2038_v28 = vld [vmem:[#allocation14 + $0x10] sm:$0xff]  }
 0x242   :  { %1897 = vmatprep.subr.bf16.mxu0 %v2037_v27 }
 0x243   :  { %1843 = vmatprep.mubr.bf16.mxu1 %v852_v29  ;;  %1898 = vmatpush3.bf16.msra.mxu0 %v2037_v27  ;;  %v2039_v29 = vld [vmem:[#allocation14 + $0x18] sm:$0xff]  }
 0x244   :  { %v2107_v32 = vpop.eup %2106  ;;  %1899 = vmatprep.subr.bf16.mxu0 %v2038_v28  ;;  %v3035_v27 = vld [vmem:[#allocation13] ss:$0 sm:$0xff] }
 0x245   :  { %v853_v9 = vpack.c.bf16 %v2105_v10, %v2107_v32 }
 0x247   :  { %1844 = vmatmul.mubr.bf16.gmra.mrb[12].mxu1 %v853_v9  ;;  %1900 = vmatpush3.bf16.msra.mxu0 %v2038_v28 }
 0x248   :  { %1901 = vmatprep.subr.bf16.mxu0 %v2039_v29 }
 0x24b   :  { %1902 = vmatpush3.bf16.msra.mxu0 %v2039_v29 }
 0x24c   :  { %v1817_v13 = vpop.f32.mrb[0].mxu0 }
 0x24d   :  { %v968_v40 = vadd.f32 %v1817_v13, %v3001_v34  ;;  %v959_v43 = vpop.f32.mrb[1].mxu0 }
 0x24e   :  { %v960_v38 = vadd.f32 %v3001_v34, %v959_v43  ;;  %v1818_v35 = vpop.f32.mrb[2].mxu0 }
 0x24f   :  { %2108 = vtanh.f32 %v968_v40  ;;  %v971_v48 = vadd.f32 %v1818_v35, %v3001_v34  ;;  %v962_v45 = vpop.f32.mrb[3].mxu0  ;;  %v2040_v35 = vld [vmem:[#allocation14 + $0x20] sm:$0xff]  }
 0x250   :  { %2110 = vtanh.f32 %v960_v38  ;;  %v963_v15 = vadd.f32 %v3001_v34, %v962_v45  ;;  %1903 = vmatprep.subr.bf16.mxu0 %v2040_v35  ;;  %v2041_v45 = vld [vmem:[#allocation14 + $0x28] sm:$0xff]  }
 0x251   :  { %2112 = vtanh.f32 %v971_v48  ;;  %1904 = vmatpush3.bf16.msra.mxu0 %v2040_v35 }
 0x252   :  { %2114 = vtanh.f32 %v963_v15  ;;  %1905 = vmatprep.subr.bf16.mxu0 %v2041_v45  ;;  %v2042_v15 = vld [vmem:[#allocation14 + $0x30] sm:$0xff]  }
 0x254   :  { %v1821_v0 = vpop.f32.mrb[4].mxu0 }
 0x255   :  { %v984_v58 = vadd.f32 %v1821_v0, %v3001_v34  ;;  %v975_v36 = vpop.f32.mrb[5].mxu0  ;;  %1906 = vmatpush3.bf16.msra.mxu0 %v2041_v45 }
 0x256   :  { %v976_v61 = vadd.f32 %v3001_v34, %v975_v36  ;;  %v1822_v50 = vpop.f32.mrb[6].mxu0  ;;  %1907 = vmatprep.subr.bf16.mxu0 %v2042_v15  ;;  %v2043_v36 = vld [vmem:[#allocation14 + $0x38] sm:$0xff]  }
 0x257   :  { %2116 = vtanh.f32 %v984_v58  ;;  %v987_v54 = vadd.f32 %v1822_v50, %v3001_v34  ;;  %v978_v49 = vpop.f32.mrb[7].mxu0 }
 0x258   :  { %2118 = vtanh.f32 %v976_v61  ;;  %v979_v8 = vadd.f32 %v3001_v34, %v978_v49 }
 0x259   :  { %v2109_v60 = vpop.eup %2108  ;;  %2120 = vtanh.f32 %v987_v54  ;;  %1908 = vmatpush3.bf16.msra.mxu0 %v2042_v15 }
 0x25a   :  { %v2111_v41 = vpop.eup %2110  ;;  %2122 = vtanh.f32 %v979_v8  ;;  %1909 = vmatprep.subr.bf16.mxu0 %v2043_v36 }
 0x25b   :  { %v2113_v56 = vpop.eup %2112 }
 0x25c   :  { %v2115_v63 = vpop.eup %2114  ;;  %v1119_v3 = vpack.c.bf16 %v2113_v56, %v2109_v60 }
 0x25d   :  { %v1118_v39 = vpack.c.bf16 %v2115_v63, %v2111_v41  ;;  %1910 = vmatpush3.bf16.msra.mxu0 %v2043_v36 }
 0x25f   :  { %1863 = vmatprep.mubr.bf16.mxu1 %v1118_v39 }
 0x260   :  { %1864 = vmatmul.mubr.bf16.vlgmr.msra.gmra.mrb[16].mxu1 %v1119_v3 }
 0x261   :  { %v2117_v30 = vpop.eup %2116 }
 0x262   :  { %v2119_v44 = vpop.eup %2118 }
 0x263   :  { %v2121_v33 = vpop.eup %2120 }
 0x264   :  { %v2123_v37 = vpop.eup %2122  ;;  %v1121_v42 = vpack.c.bf16 %v2121_v33, %v2117_v30 }
 0x265   :  { %v1120_v62 = vpack.c.bf16 %v2123_v37, %v2119_v44 }
 0x267   :  { %1867 = vmatprep.mubr.bf16.mxu1 %v1120_v62 }
 0x268   :  { %1868 = vmatmul.mubr.bf16.gmra.mrb[20].mxu1 %v1121_v42 }
 0x279   :  { %v1825_v1 = vpop.f32.mrb[8].mxu0 }
 0x27a   :  { %v1000_v59 = vadd.f32 %v1825_v1, %v3001_v34  ;;  %v991_v4 = vpop.f32.mrb[9].mxu0 }
 0x27b   :  { %v992_v47 = vadd.f32 %v3001_v34, %v991_v4  ;;  %v1826_v6 = vpop.f32.mrb[10].mxu0 }
 0x27c   :  { %2124 = vtanh.f32 %v1000_v59  ;;  %v1003_v11 = vadd.f32 %v1826_v6, %v3001_v34  ;;  %v994_v46 = vpop.f32.mrb[11].mxu0 }
 0x27d   :  { %2126 = vtanh.f32 %v992_v47  ;;  %v995_v14 = vadd.f32 %v3001_v34, %v994_v46 }
 0x27e   :  { %2128 = vtanh.f32 %v1003_v11 }
 0x27f   :  { %2130 = vtanh.f32 %v995_v14 }
 0x286   :  { %v2125_v19 = vpop.eup %2124 }
 0x287   :  { %v2127_v53 = vpop.eup %2126 }
 0x288   :  { %v2129_v5 = vpop.eup %2128 }
 0x289   :  { %v2131_v51 = vpop.eup %2130  ;;  %v1123_v20 = vpack.c.bf16 %v2129_v5, %v2125_v19 }
 0x28a   :  { %v1122_v55 = vpack.c.bf16 %v2131_v51, %v2127_v53 }
 0x28c   :  { %1871 = vmatprep.mubr.bf16.mxu1 %v1122_v55 }
 0x28d   :  { %1872 = vmatmul.mubr.bf16.gmra.mrb[24].mxu1 %v1123_v20 }
 0x28e   :  { %v1829_v31 = vpop.f32.mrb[12].mxu0 }
 0x28f   :  { %v1016_v52 = vadd.f32 %v1829_v31, %v3001_v34  ;;  %v1007_v26 = vpop.f32.mrb[13].mxu0 }
 0x290   :  { %v1008_v21 = vadd.f32 %v3001_v34, %v1007_v26  ;;  %v1830_v16 = vpop.f32.mrb[14].mxu0 }
 0x291   :  { %2132 = vtanh.f32 %v1016_v52  ;;  %v1019_v2 = vadd.f32 %v1830_v16, %v3001_v34  ;;  %v1010_v17 = vpop.f32.mrb[15].mxu0 }
 0x292   :  { %2134 = vtanh.f32 %v1008_v21  ;;  %v1011_v57 = vadd.f32 %v3001_v34, %v1010_v17 }
 0x293   :  { %2136 = vtanh.f32 %v1019_v2 }
 0x294   :  { %2138 = vtanh.f32 %v1011_v57 }
 0x29b   :  { %v2133_v18 = vpop.eup %2132 }
 0x29c   :  { %v2135_v23 = vpop.eup %2134 }
 0x29d   :  { %v2137_v24 = vpop.eup %2136 }
 0x29e   :  { %v2139_v7 = vpop.eup %2138  ;;  %v1125_v25 = vpack.c.bf16 %v2137_v24, %v2133_v18 }
 0x29f   :  { %v1124_v22 = vpack.c.bf16 %v2139_v7, %v2135_v23 }
 0x2a1   :  { %1875 = vmatprep.mubr.bf16.mxu1 %v1124_v22 }
 0x2a2   :  { %1876 = vmatmul.mubr.bf16.gmra.mrb[28].mxu1 %v1125_v25 }
 0x2b3   :  { %v1833_v10 = vpop.f32.mrb[0].mxu1 }
 0x2b4   :  { %v1032_v32 = vadd.f32 %v1833_v10, %v3001_v34  ;;  %v1023_v9 = vpop.f32.mrb[1].mxu1 }
 0x2b5   :  { %v1024_v13 = vadd.f32 %v3001_v34, %v1023_v9  ;;  %v1834_v40 = vpop.f32.mrb[2].mxu1 }
 0x2b6   :  { %2140 = vtanh.f32 %v1032_v32  ;;  %v1035_v43 = vadd.f32 %v1834_v40, %v3001_v34  ;;  %v1026_v38 = vpop.f32.mrb[3].mxu1 }
 0x2b7   :  { %2142 = vtanh.f32 %v1024_v13  ;;  %v1027_v48 = vadd.f32 %v3001_v34, %v1026_v38 }
 0x2b8   :  { %2144 = vtanh.f32 %v1035_v43 }
 0x2b9   :  { %2146 = vtanh.f32 %v1027_v48 }
 0x2c0   :  { %v2141_v0 = vpop.eup %2140 }
 0x2c1   :  { %v2143_v58 = vpop.eup %2142 }
 0x2c2   :  { %v2145_v61 = vpop.eup %2144 }
 0x2c3   :  { %v2147_v50 = vpop.eup %2146  ;;  %v1127_v54 = vpack.c.bf16 %v2145_v61, %v2141_v0 }
 0x2c4   :  { %v1126_v49 = vpack.c.bf16 %v2147_v50, %v2143_v58 }
 0x2c6   :  { %1879 = vmatprep.mubr.bf16.mxu1 %v1126_v49 }
 0x2c7   :  { %1880 = vmatmul.mubr.bf16.gmra.mrb[32].mxu1 %v1127_v54 }
 0x2d4   :  { %v1837_v8 = vpop.f32.mrb[4].mxu1 }
 0x2d5   :  { %v1048_v60 = vadd.f32 %v1837_v8, %v3001_v34  ;;  %v1039_v41 = vpop.f32.mrb[5].mxu1 }
 0x2d6   :  { %v1040_v56 = vadd.f32 %v3001_v34, %v1039_v41  ;;  %v1838_v63 = vpop.f32.mrb[6].mxu1 }
 0x2d7   :  { %2148 = vtanh.f32 %v1048_v60  ;;  %v1051_v3 = vadd.f32 %v1838_v63, %v3001_v34  ;;  %v1042_v39 = vpop.f32.mrb[7].mxu1 }
 0x2d8   :  { %2150 = vtanh.f32 %v1040_v56  ;;  %v1043_v30 = vadd.f32 %v3001_v34, %v1042_v39 }
 0x2d9   :  { %2152 = vtanh.f32 %v1051_v3 }
 0x2da   :  { %2154 = vtanh.f32 %v1043_v30 }
 0x2e1   :  { %v2149_v44 = vpop.eup %2148 }
 0x2e2   :  { %v2151_v33 = vpop.eup %2150 }
 0x2e3   :  { %v2153_v37 = vpop.eup %2152 }
 0x2e4   :  { %v2155_v42 = vpop.eup %2154  ;;  %v1129_v62 = vpack.c.bf16 %v2153_v37, %v2149_v44 }
 0x2e5   :  { %v1128_v1 = vpack.c.bf16 %v2155_v42, %v2151_v33 }
 0x2e7   :  { %1883 = vmatprep.mubr.bf16.mxu1 %v1128_v1 }
 0x2e8   :  { %1884 = vmatmul.mubr.bf16.gmra.mrb[36].mxu1 %v1129_v62 }
 0x2f9   :  { %v1841_v59 = vpop.f32.mrb[8].mxu1 }
 0x2fa   :  { %v1064_v4 = vadd.f32 %v1841_v59, %v3001_v34  ;;  %v1055_v47 = vpop.f32.mrb[9].mxu1 }
 0x2fb   :  { %v1056_v6 = vadd.f32 %v3001_v34, %v1055_v47  ;;  %v1842_v11 = vpop.f32.mrb[10].mxu1 }
 0x2fc   :  { %2156 = vtanh.f32 %v1064_v4  ;;  %v1067_v46 = vadd.f32 %v1842_v11, %v3001_v34  ;;  %v1058_v14 = vpop.f32.mrb[11].mxu1 }
 0x2fd   :  { %2158 = vtanh.f32 %v1056_v6  ;;  %v1059_v19 = vadd.f32 %v3001_v34, %v1058_v14 }
 0x2fe   :  { %2160 = vtanh.f32 %v1067_v46 }
 0x2ff   :  { %2162 = vtanh.f32 %v1059_v19 }
 0x306   :  { %v2157_v53 = vpop.eup %2156 }
 0x307   :  { %v2159_v5 = vpop.eup %2158 }
 0x308   :  { %v2161_v51 = vpop.eup %2160 }
 0x309   :  { %v2163_v20 = vpop.eup %2162  ;;  %v1131_v55 = vpack.c.bf16 %v2161_v51, %v2157_v53 }
 0x30a   :  { %v1130_v31 = vpack.c.bf16 %v2163_v20, %v2159_v5 }
 0x30c   :  { %1887 = vmatprep.mubr.bf16.mxu1 %v1130_v31 }
 0x30d   :  { %1888 = vmatmul.mubr.bf16.gmra.mrb[40].mxu1 %v1131_v55 }
 0x31a   :  { %v1845_v52 = vpop.f32.mrb[12].mxu1 }
 0x31b   :  { %v1080_v26 = vadd.f32 %v1845_v52, %v3001_v34  ;;  %v1071_v21 = vpop.f32.mrb[13].mxu1 }
 0x31c   :  { %v1072_v16 = vadd.f32 %v3001_v34, %v1071_v21  ;;  %v1846_v2 = vpop.f32.mrb[14].mxu1 }
 0x31d   :  { %2164 = vtanh.f32 %v1080_v26  ;;  %v1083_v17 = vadd.f32 %v1846_v2, %v3001_v34  ;;  %v1074_v57 = vpop.f32.mrb[15].mxu1 }
 0x31e   :  { %2166 = vtanh.f32 %v1072_v16  ;;  %v1075_v18 = vadd.f32 %v3001_v34, %v1074_v57 }
 0x31f   :  { %2168 = vtanh.f32 %v1083_v17 }
 0x320   :  { %2170 = vtanh.f32 %v1075_v18 }
 0x327   :  { %v2165_v23 = vpop.eup %2164 }
 0x328   :  { %v2167_v24 = vpop.eup %2166 }
 0x329   :  { %v2169_v7 = vpop.eup %2168 }
 0x32a   :  { %v2171_v25 = vpop.eup %2170  ;;  %v1133_v22 = vpack.c.bf16 %v2169_v7, %v2165_v23 }
 0x32b   :  { %v1132_v12 = vpack.c.bf16 %v2171_v25, %v2167_v24 }
 0x32d   :  { %1891 = vmatprep.mubr.bf16.mxu1 %v1132_v12 }
 0x32e   :  { %1892 = vmatmul.mubr.bf16.gmra.mrb[44].mxu1 %v1133_v22 }
 0x333   :  { %v1865_v28 = vpop.f32.mrb[16].mxu1 }
 0x334   :  { %v1248_v29 = vadd.f32 %v1865_v28, %v3035_v27  ;;  %v1239_v10 = vpop.f32.mrb[17].mxu1 }
 0x335   :  { %v1240_v32 = vadd.f32 %v3035_v27, %v1239_v10  ;;  %v1866_v9 = vpop.f32.mrb[18].mxu1 }
 0x336   :  { %2172 = vtanh.f32 %v1248_v29  ;;  %v1251_v34 = vadd.f32 %v1866_v9, %v3035_v27  ;;  %v1242_v13 = vpop.f32.mrb[19].mxu1 }
 0x337   :  { %2174 = vtanh.f32 %v1240_v32  ;;  %v1243_v40 = vadd.f32 %v3035_v27, %v1242_v13 }
 0x338   :  { %2176 = vtanh.f32 %v1251_v34 }
 0x339   :  { %2178 = vtanh.f32 %v1243_v40 }
 0x33b   :  { %v1869_v43 = vpop.f32.mrb[20].mxu1 }
 0x33c   :  { %v1264_v38 = vadd.f32 %v1869_v43, %v3035_v27  ;;  %v1255_v35 = vpop.f32.mrb[21].mxu1 }
 0x33d   :  { %v1256_v48 = vadd.f32 %v3035_v27, %v1255_v35  ;;  %v1870_v45 = vpop.f32.mrb[22].mxu1 }
 0x33e   :  { %2180 = vtanh.f32 %v1264_v38  ;;  %v1267_v15 = vadd.f32 %v1870_v45, %v3035_v27  ;;  %v1258_v0 = vpop.f32.mrb[23].mxu1 }
 0x33f   :  { %2182 = vtanh.f32 %v1256_v48  ;;  %v1259_v58 = vadd.f32 %v3035_v27, %v1258_v0 }
 0x340   :  { %v2173_v36 = vpop.eup %2172  ;;  %2184 = vtanh.f32 %v1267_v15 }
 0x341   :  { %v2175_v61 = vpop.eup %2174  ;;  %2186 = vtanh.f32 %v1259_v58 }
 0x342   :  { %v2177_v50 = vpop.eup %2176 }
 0x343   :  { %v2179_v54 = vpop.eup %2178  ;;  %v1399_v49 = vpack.c.bf16 %v2177_v50, %v2173_v36 }
 0x344   :  { %v1398_v8 = vpack.c.bf16 %v2179_v54, %v2175_v61 }
 0x346   :  { %1911 = vmatprep.mubr.bf16.mxu0 %v1398_v8 }
 0x347   :  { %1912 = vmatmul.mubr.bf16.vlgmr.msra.gmra.mrb[16].mxu0 %v1399_v49 }
 0x348   :  { %v2181_v60 = vpop.eup %2180 }
 0x349   :  { %v2183_v41 = vpop.eup %2182 }
 0x34a   :  { %v2185_v56 = vpop.eup %2184 }
 0x34b   :  { %v2187_v63 = vpop.eup %2186  ;;  %v1401_v3 = vpack.c.bf16 %v2185_v56, %v2181_v60 }
 0x34c   :  { %v1400_v39 = vpack.c.bf16 %v2187_v63, %v2183_v41 }
 0x34e   :  { %1915 = vmatprep.mubr.bf16.mxu0 %v1400_v39 }
 0x34f   :  { %1916 = vmatmul.mubr.bf16.gmra.mrb[20].mxu0 %v1401_v3 }
 0x360   :  { %v1873_v30 = vpop.f32.mrb[24].mxu1 }
 0x361   :  { %v1280_v44 = vadd.f32 %v1873_v30, %v3035_v27  ;;  %v1271_v33 = vpop.f32.mrb[25].mxu1 }
 0x362   :  { %v1272_v37 = vadd.f32 %v3035_v27, %v1271_v33  ;;  %v1874_v42 = vpop.f32.mrb[26].mxu1 }
 0x363   :  { %2188 = vtanh.f32 %v1280_v44  ;;  %v1283_v62 = vadd.f32 %v1874_v42, %v3035_v27  ;;  %v1274_v1 = vpop.f32.mrb[27].mxu1 }
 0x364   :  { %2190 = vtanh.f32 %v1272_v37  ;;  %v1275_v59 = vadd.f32 %v3035_v27, %v1274_v1 }
 0x365   :  { %2192 = vtanh.f32 %v1283_v62 }
 0x366   :  { %2194 = vtanh.f32 %v1275_v59 }
 0x36d   :  { %v2189_v4 = vpop.eup %2188 }
 0x36e   :  { %v2191_v47 = vpop.eup %2190 }
 0x36f   :  { %v2193_v6 = vpop.eup %2192 }
 0x370   :  { %v2195_v11 = vpop.eup %2194  ;;  %v1403_v46 = vpack.c.bf16 %v2193_v6, %v2189_v4 }
 0x371   :  { %v1402_v14 = vpack.c.bf16 %v2195_v11, %v2191_v47 }
 0x373   :  { %1919 = vmatprep.mubr.bf16.mxu0 %v1402_v14 }
 0x374   :  { %1920 = vmatmul.mubr.bf16.gmra.mrb[24].mxu0 %v1403_v46 }
 0x375   :  { %v1877_v19 = vpop.f32.mrb[28].mxu1 }
 0x376   :  { %v1296_v53 = vadd.f32 %v1877_v19, %v3035_v27  ;;  %v1287_v5 = vpop.f32.mrb[29].mxu1 }
 0x377   :  { %v1288_v51 = vadd.f32 %v3035_v27, %v1287_v5  ;;  %v1878_v20 = vpop.f32.mrb[30].mxu1 }
 0x378   :  { %2196 = vtanh.f32 %v1296_v53  ;;  %v1299_v55 = vadd.f32 %v1878_v20, %v3035_v27  ;;  %v1290_v31 = vpop.f32.mrb[31].mxu1 }
 0x379   :  { %2198 = vtanh.f32 %v1288_v51  ;;  %v1291_v52 = vadd.f32 %v3035_v27, %v1290_v31 }
 0x37a   :  { %2200 = vtanh.f32 %v1299_v55 }
 0x37b   :  { %2202 = vtanh.f32 %v1291_v52  ;;  %v3069_v52 = vld [vmem:[#allocation16] ss:$0 sm:$0xff] }
 0x382   :  { %v2197_v26 = vpop.eup %2196 }
 0x383   :  { %v2199_v21 = vpop.eup %2198 }
 0x384   :  { %v2201_v16 = vpop.eup %2200 }
 0x385   :  { %v2203_v2 = vpop.eup %2202  ;;  %v1405_v17 = vpack.c.bf16 %v2201_v16, %v2197_v26 }
 0x386   :  { %v1404_v57 = vpack.c.bf16 %v2203_v2, %v2199_v21 }
 0x388   :  { %1923 = vmatprep.mubr.bf16.mxu0 %v1404_v57 }
 0x389   :  { %1924 = vmatmul.mubr.bf16.gmra.mrb[28].mxu0 %v1405_v17 }
 0x39a   :  { %v1881_v18 = vpop.f32.mrb[32].mxu1 }
 0x39b   :  { %v1312_v23 = vadd.f32 %v1881_v18, %v3035_v27  ;;  %v1303_v24 = vpop.f32.mrb[33].mxu1 }
 0x39c   :  { %v1304_v7 = vadd.f32 %v3035_v27, %v1303_v24  ;;  %v1882_v25 = vpop.f32.mrb[34].mxu1 }
 0x39d   :  { %2204 = vtanh.f32 %v1312_v23  ;;  %v1315_v22 = vadd.f32 %v1882_v25, %v3035_v27  ;;  %v1306_v12 = vpop.f32.mrb[35].mxu1 }
 0x39e   :  { %2206 = vtanh.f32 %v1304_v7  ;;  %v1307_v28 = vadd.f32 %v3035_v27, %v1306_v12 }
 0x39f   :  { %2208 = vtanh.f32 %v1315_v22 }
 0x3a0   :  { %2210 = vtanh.f32 %v1307_v28 }
 0x3a7   :  { %v2205_v29 = vpop.eup %2204 }
 0x3a8   :  { %v2207_v10 = vpop.eup %2206 }
 0x3a9   :  { %v2209_v32 = vpop.eup %2208 }
 0x3aa   :  { %v2211_v9 = vpop.eup %2210  ;;  %v1407_v34 = vpack.c.bf16 %v2209_v32, %v2205_v29 }
 0x3ab   :  { %v1406_v13 = vpack.c.bf16 %v2211_v9, %v2207_v10 }
 0x3ad   :  { %1927 = vmatprep.mubr.bf16.mxu0 %v1406_v13 }
 0x3ae   :  { %1928 = vmatmul.mubr.bf16.gmra.mrb[32].mxu0 %v1407_v34 }
 0x3bb   :  { %v1885_v40 = vpop.f32.mrb[36].mxu1 }
 0x3bc   :  { %v1328_v43 = vadd.f32 %v1885_v40, %v3035_v27  ;;  %v1319_v38 = vpop.f32.mrb[37].mxu1 }
 0x3bd   :  { %v1320_v35 = vadd.f32 %v3035_v27, %v1319_v38  ;;  %v1886_v48 = vpop.f32.mrb[38].mxu1 }
 0x3be   :  { %2212 = vtanh.f32 %v1328_v43  ;;  %v1331_v45 = vadd.f32 %v1886_v48, %v3035_v27  ;;  %v1322_v15 = vpop.f32.mrb[39].mxu1 }
 0x3bf   :  { %2214 = vtanh.f32 %v1320_v35  ;;  %v1323_v0 = vadd.f32 %v3035_v27, %v1322_v15 }
 0x3c0   :  { %2216 = vtanh.f32 %v1331_v45 }
 0x3c1   :  { %2218 = vtanh.f32 %v1323_v0 }
 0x3c8   :  { %v2213_v58 = vpop.eup %2212 }
 0x3c9   :  { %v2215_v36 = vpop.eup %2214 }
 0x3ca   :  { %v2217_v61 = vpop.eup %2216 }
 0x3cb   :  { %v2219_v50 = vpop.eup %2218  ;;  %v1409_v54 = vpack.c.bf16 %v2217_v61, %v2213_v58 }
 0x3cc   :  { %v1408_v49 = vpack.c.bf16 %v2219_v50, %v2215_v36 }
 0x3ce   :  { %1931 = vmatprep.mubr.bf16.mxu0 %v1408_v49 }
 0x3cf   :  { %1932 = vmatmul.mubr.bf16.gmra.mrb[36].mxu0 %v1409_v54 }
 0x3e0   :  { %v1889_v8 = vpop.f32.mrb[40].mxu1 }
 0x3e1   :  { %v1344_v60 = vadd.f32 %v1889_v8, %v3035_v27  ;;  %v1335_v41 = vpop.f32.mrb[41].mxu1 }
 0x3e2   :  { %v1336_v56 = vadd.f32 %v3035_v27, %v1335_v41  ;;  %v1890_v63 = vpop.f32.mrb[42].mxu1 }
 0x3e3   :  { %2220 = vtanh.f32 %v1344_v60  ;;  %v1347_v3 = vadd.f32 %v1890_v63, %v3035_v27  ;;  %v1338_v39 = vpop.f32.mrb[43].mxu1 }
 0x3e4   :  { %2222 = vtanh.f32 %v1336_v56  ;;  %v1339_v30 = vadd.f32 %v3035_v27, %v1338_v39 }
 0x3e5   :  { %2224 = vtanh.f32 %v1347_v3 }
 0x3e6   :  { %2226 = vtanh.f32 %v1339_v30 }
 0x3ed   :  { %v2221_v44 = vpop.eup %2220 }
 0x3ee   :  { %v2223_v33 = vpop.eup %2222 }
 0x3ef   :  { %v2225_v37 = vpop.eup %2224 }
 0x3f0   :  { %v2227_v42 = vpop.eup %2226  ;;  %v1411_v62 = vpack.c.bf16 %v2225_v37, %v2221_v44 }
 0x3f1   :  { %v1410_v1 = vpack.c.bf16 %v2227_v42, %v2223_v33 }
 0x3f3   :  { %1935 = vmatprep.mubr.bf16.mxu0 %v1410_v1 }
 0x3f4   :  { %1936 = vmatmul.mubr.bf16.gmra.mrb[40].mxu0 %v1411_v62 }
 0x401   :  { %v1893_v59 = vpop.f32.mrb[44].mxu1 }
 0x402   :  { %v1360_v4 = vadd.f32 %v1893_v59, %v3035_v27  ;;  %v1351_v47 = vpop.f32.mrb[45].mxu1 }
 0x403   :  { %v1352_v6 = vadd.f32 %v3035_v27, %v1351_v47  ;;  %v1894_v11 = vpop.f32.mrb[46].mxu1 }
 0x404   :  { %2228 = vtanh.f32 %v1360_v4  ;;  %v1363_v46 = vadd.f32 %v1894_v11, %v3035_v27  ;;  %v1354_v14 = vpop.f32.mrb[47].mxu1 }
 0x405   :  { %2230 = vtanh.f32 %v1352_v6  ;;  %v1355_v19 = vadd.f32 %v3035_v27, %v1354_v14 }
 0x406   :  { %2232 = vtanh.f32 %v1363_v46 }
 0x407   :  { %2234 = vtanh.f32 %v1355_v19 }
 0x40e   :  { %v2229_v53 = vpop.eup %2228 }
 0x40f   :  { %v2231_v5 = vpop.eup %2230 }
 0x410   :  { %v2233_v51 = vpop.eup %2232 }
 0x411   :  { %v2235_v20 = vpop.eup %2234  ;;  %v1413_v55 = vpack.c.bf16 %v2233_v51, %v2229_v53 }
 0x412   :  { %v1412_v31 = vpack.c.bf16 %v2235_v20, %v2231_v5 }
 0x414   :  { %1939 = vmatprep.mubr.bf16.mxu0 %v1412_v31 }
 0x415   :  { %1940 = vmatmul.mubr.bf16.gmra.mrb[44].mxu0 %v1413_v55 }
 0x41a   :  { %v1913_v26 = vpop.f32.mrb[16].mxu0 }
 0x41b   :  { %v1528_v21 = vadd.f32 %v1913_v26, %v3069_v52  ;;  %v1519_v16 = vpop.f32.mrb[17].mxu0 }
 0x41c   :  { %v1520_v2 = vadd.f32 %v3069_v52, %v1519_v16  ;;  %v1914_v17 = vpop.f32.mrb[18].mxu0 }
 0x41d   :  { %1648 = vst [vmem:[#allocation17 + $0x10] sm:$0xff] %v1528_v21  ;;  %v1531_v27 = vadd.f32 %v1914_v17, %v3069_v52  ;;  %v1522_v57 = vpop.f32.mrb[19].mxu0 }
 0x41e   :  { %1646 = vst [vmem:[#allocation17] sm:$0xff] %v1520_v2  ;;  %v1523_v18 = vadd.f32 %v3069_v52, %v1522_v57 }
 0x41f   :  { %1649 = vst [vmem:[#allocation17 + $0x18] sm:$0xff] %v1531_v27 }
 0x420   :  { %1647 = vst [vmem:[#allocation17 + $0x8] sm:$0xff] %v1523_v18 }
 0x422   :  { %v1917_v23 = vpop.f32.mrb[20].mxu0 }
 0x423   :  { %v1544_v24 = vadd.f32 %v1917_v23, %v3069_v52  ;;  %v1535_v7 = vpop.f32.mrb[21].mxu0 }
 0x424   :  { %v1536_v25 = vadd.f32 %v3069_v52, %v1535_v7  ;;  %v1918_v22 = vpop.f32.mrb[22].mxu0 }
 0x425   :  { %1652 = vst [vmem:[#allocation17 + $0x30] sm:$0xff] %v1544_v24  ;;  %v1547_v12 = vadd.f32 %v1918_v22, %v3069_v52  ;;  %v1538_v28 = vpop.f32.mrb[23].mxu0 }
 0x426   :  { %1650 = vst [vmem:[#allocation17 + $0x20] sm:$0xff] %v1536_v25  ;;  %v1539_v29 = vadd.f32 %v3069_v52, %v1538_v28 }
 0x427   :  { %1653 = vst [vmem:[#allocation17 + $0x38] sm:$0xff] %v1547_v12 }
 0x428   :  { %1651 = vst [vmem:[#allocation17 + $0x28] sm:$0xff] %v1539_v29 }
 0x447   :  { %v1921_v10 = vpop.f32.mrb[24].mxu0 }
 0x448   :  { %v1560_v32 = vadd.f32 %v1921_v10, %v3069_v52  ;;  %v1551_v9 = vpop.f32.mrb[25].mxu0 }
 0x449   :  { %v1552_v34 = vadd.f32 %v3069_v52, %v1551_v9  ;;  %v1922_v13 = vpop.f32.mrb[26].mxu0 }
 0x44a   :  { %1656 = vst [vmem:[#allocation17 + $0x50] sm:$0xff] %v1560_v32  ;;  %v1563_v40 = vadd.f32 %v1922_v13, %v3069_v52  ;;  %v1554_v43 = vpop.f32.mrb[27].mxu0 }
 0x44b   :  { %1654 = vst [vmem:[#allocation17 + $0x40] sm:$0xff] %v1552_v34  ;;  %v1555_v38 = vadd.f32 %v3069_v52, %v1554_v43 }
 0x44c   :  { %1657 = vst [vmem:[#allocation17 + $0x58] sm:$0xff] %v1563_v40 }
 0x44d   :  { %1655 = vst [vmem:[#allocation17 + $0x48] sm:$0xff] %v1555_v38 }
 0x45c   :  { %v1925_v35 = vpop.f32.mrb[28].mxu0 }
 0x45d   :  { %v1576_v48 = vadd.f32 %v1925_v35, %v3069_v52  ;;  %v1567_v45 = vpop.f32.mrb[29].mxu0 }
 0x45e   :  { %v1568_v15 = vadd.f32 %v3069_v52, %v1567_v45  ;;  %v1926_v0 = vpop.f32.mrb[30].mxu0 }
 0x45f   :  { %1660 = vst [vmem:[#allocation17 + $0x70] sm:$0xff] %v1576_v48  ;;  %v1579_v58 = vadd.f32 %v1926_v0, %v3069_v52  ;;  %v1570_v36 = vpop.f32.mrb[31].mxu0 }
 0x460   :  { %1658 = vst [vmem:[#allocation17 + $0x60] sm:$0xff] %v1568_v15  ;;  %v1571_v61 = vadd.f32 %v3069_v52, %v1570_v36 }
 0x461   :  { %1661 = vst [vmem:[#allocation17 + $0x78] sm:$0xff] %v1579_v58 }
 0x462   :  { %1659 = vst [vmem:[#allocation17 + $0x68] sm:$0xff] %v1571_v61 }
 0x481   :  { %v1929_v50 = vpop.f32.mrb[32].mxu0 }
 0x482   :  { %v1592_v54 = vadd.f32 %v1929_v50, %v3069_v52  ;;  %v1583_v49 = vpop.f32.mrb[33].mxu0 }
 0x483   :  { %v1584_v8 = vadd.f32 %v3069_v52, %v1583_v49  ;;  %v1930_v60 = vpop.f32.mrb[34].mxu0 }
 0x484   :  { %1664 = vst [vmem:[#allocation17 + $0x90] sm:$0xff] %v1592_v54  ;;  %v1595_v41 = vadd.f32 %v1930_v60, %v3069_v52  ;;  %v1586_v56 = vpop.f32.mrb[35].mxu0 }
 0x485   :  { %1662 = vst [vmem:[#allocation17 + $0x80] sm:$0xff] %v1584_v8  ;;  %v1587_v63 = vadd.f32 %v3069_v52, %v1586_v56 }
 0x486   :  { %1665 = vst [vmem:[#allocation17 + $0x98] sm:$0xff] %v1595_v41 }
 0x487   :  { %1663 = vst [vmem:[#allocation17 + $0x88] sm:$0xff] %v1587_v63 }
 0x4a2   :  { %v1933_v3 = vpop.f32.mrb[36].mxu0 }
 0x4a3   :  { %v1608_v39 = vadd.f32 %v1933_v3, %v3069_v52  ;;  %v1599_v30 = vpop.f32.mrb[37].mxu0 }
 0x4a4   :  { %v1600_v44 = vadd.f32 %v3069_v52, %v1599_v30  ;;  %v1934_v33 = vpop.f32.mrb[38].mxu0 }
 0x4a5   :  { %1668 = vst [vmem:[#allocation17 + $0xb0] sm:$0xff] %v1608_v39  ;;  %v1611_v37 = vadd.f32 %v1934_v33, %v3069_v52  ;;  %v1602_v42 = vpop.f32.mrb[39].mxu0 }
 0x4a6   :  { %1666 = vst [vmem:[#allocation17 + $0xa0] sm:$0xff] %v1600_v44  ;;  %v1603_v62 = vadd.f32 %v3069_v52, %v1602_v42 }
 0x4a7   :  { %1669 = vst [vmem:[#allocation17 + $0xb8] sm:$0xff] %v1611_v37 }
 0x4a8   :  { %1667 = vst [vmem:[#allocation17 + $0xa8] sm:$0xff] %v1603_v62 }
 0x4c7   :  { %v1937_v1 = vpop.f32.mrb[40].mxu0 }
 0x4c8   :  { %v1624_v59 = vadd.f32 %v1937_v1, %v3069_v52  ;;  %v1615_v4 = vpop.f32.mrb[41].mxu0 }
 0x4c9   :  { %v1616_v47 = vadd.f32 %v3069_v52, %v1615_v4  ;;  %v1938_v6 = vpop.f32.mrb[42].mxu0 }
 0x4ca   :  { %1672 = vst [vmem:[#allocation17 + $0xd0] sm:$0xff] %v1624_v59  ;;  %v1627_v11 = vadd.f32 %v1938_v6, %v3069_v52  ;;  %v1618_v46 = vpop.f32.mrb[43].mxu0 }
 0x4cb   :  { %1670 = vst [vmem:[#allocation17 + $0xc0] sm:$0xff] %v1616_v47  ;;  %v1619_v14 = vadd.f32 %v3069_v52, %v1618_v46 }
 0x4cc   :  { %1673 = vst [vmem:[#allocation17 + $0xd8] sm:$0xff] %v1627_v11 }
 0x4cd   :  { %1671 = vst [vmem:[#allocation17 + $0xc8] sm:$0xff] %v1619_v14 }
 0x4e8   :  { %v1941_v19 = vpop.f32.mrb[44].mxu0 }
 0x4e9   :  { %v1640_v53 = vadd.f32 %v1941_v19, %v3069_v52  ;;  %v1631_v5 = vpop.f32.mrb[45].mxu0 }
 0x4ea   :  { %v1632_v51 = vadd.f32 %v3069_v52, %v1631_v5  ;;  %v1942_v20 = vpop.f32.mrb[46].mxu0 }
 0x4eb   :  { %1676 = vst [vmem:[#allocation17 + $0xf0] sm:$0xff] %v1640_v53  ;;  %v1643_v55 = vadd.f32 %v1942_v20, %v3069_v52  ;;  %v1634_v31 = vpop.f32.mrb[47].mxu0 }
 0x4ec   :  { %1674 = vst [vmem:[#allocation17 + $0xe0] sm:$0xff] %v1632_v51  ;;  %v1635_v26 = vadd.f32 %v3069_v52, %v1634_v31 }
 0x4ed   :  { %1677 = vst [vmem:[#allocation17 + $0xf8] sm:$0xff] %v1643_v55 }
 0x4ee   :  { %1675 = vst [vmem:[#allocation17 + $0xe8] sm:$0xff] %v1635_v26 }
 0x4ef   :  { %2445 = shalt.err (!%p2442_p6)
}
 0x4f0   :  { %s2446_s30 = scalar_lea.hbm %s3127_s9, 4096 }
 0x4f1   :  { %p2447_p7 = scmp.ne.s32.totalorder %s3127_s9, %s2446_s30  ;;  %p2450_p8 = scmp.lt.u32.totalorder %s2446_s30, %s3127_s9 }
 0x4f3   :  { %p2452_p9 = pnand %p2450_p8, %p2447_p7 }
 0x4f5   :  { %2455 = shalt.err (!%p2452_p9)
}
 0x4f6   :  { %1689 = dma.vmem_to_hbm [thread:$0]  %s1684_s25, 4096, %s3127_s9, [#allocation4], %s2475_s7, %s2475_s7, %s2476_s1  }
 0x4f7   :  { %2466 = dma.done.wait [#allocation4], 4096  }
 0x4f8   :  { %2467 = vsyncadd [#allocation4], 4294963200 }
 0x4f9   :  { %1693 = vsyncpa [#allocation3], 1 }
 0x4fa   :  { %1694 = vsyncpa [#allocation6], 1 }
 0x4fb   :  { %1695 = vsyncpa [#allocation9], 1 }
 0x4fc   :  { %1696 = vsyncpa [#allocation12], 1 }
 0x4fd   :  { %1697 = vsyncpa [#allocation15], 1 }
 0x4fe   :  { %1698 = vsyncpa [#allocation4], 1 }

</bundles_post_ra>
